<compile_context>
chip_gen: v7x
topology: tpu7x:2x2x1
jax: 0.10.0
libtpu: 0.0.40
codegen_flags: <defaults>
</compile_context>

<pallas_src>
import functools
import math

import jax
import jax.numpy as jnp
from jax import lax
from jax.experimental import pallas as pl
from jax.experimental.pallas import tpu as pltpu


# ---------------------------------------------------------------------------
# VMEM budgeting helpers.
# ---------------------------------------------------------------------------
def _vmem_limit_bytes():
    try:
        cap = pltpu.get_tpu_info().vmem_capacity_bytes
    except Exception:
        cap = 64 * 1024 * 1024          # assume the smallest (v7x) physical VMEM
    # ~25% headroom under physical capacity, capped at 96 MiB (v5e/v6e).
    return min(int(cap * 0.75), 96 * 1024 * 1024)


_VMEM_LIMIT = _vmem_limit_bytes()
_LIN_BLOCK_BUDGET = 6 * 1024 * 1024     # per-buffer budget for linear-kernel blocks
_ATTN_BLOCK_BUDGET = 4 * 1024 * 1024    # per-buffer budget for attention blocks


def _pick_tile(total, max_elems, cap, align):
    """Full extent if it fits, else the largest `align`-multiple tile under budget."""
    limit = min(cap, max(align, max_elems))
    if total <= limit:
        return total
    return (limit // align) * align


def _attn_q_block(sq, d, itemsize):
    cap = min(512, max(128, _ATTN_BLOCK_BUDGET // (d * itemsize)))
    if sq <= cap:
        return sq
    return (cap // 8) * 8


def _attn_kv_block(skv, width, itemsize):
    # The kv axis is a reduction axis -> the block must divide Skv exactly so the
    # padded remainder never enters the running softmax.
    cap = min(1024, max(128, _ATTN_BLOCK_BUDGET // (width * itemsize)))
    if skv <= cap:
        return skv
    b = (cap // 8) * 8
    while b >= 8:
        if skv % b == 0:
            return b
        b -= 8
    return skv  # no aligned divisor; fall back to the full extent


# ---------------------------------------------------------------------------
# Linear (nn.Linear, bias=False), tiled over M = B*S and (when needed) D_out.
# ---------------------------------------------------------------------------
def _linear_kernel(x_ref, w_ref, o_ref, *, scale):
    # x: (bm, D_in), w: (bn, D_in) (PyTorch (out, in) layout).  Contract the last
    # dim of both (trans-B form, native MXU push; no in-kernel transpose op).
    acc = lax.dot_general(
        x_ref[...], w_ref[...],
        dimension_numbers=(((1,), (1,)), ((), ())),
        preferred_element_type=jnp.float32,
    )
    if scale != 1.0:
        acc = acc * scale               # epilogue (e.g. 1/sqrt(dh) for q), hidden under MXU
    o_ref[...] = acc.astype(o_ref.dtype)


def _pallas_linear(x, w, *, scale=1.0):
    """x: (B, S, D_in) @ w.T with w: (D_out, D_in)  ->  (B, S, D_out)."""
    B, S, D_in = x.shape
    D_out = w.shape[0]
    M = B * S
    x2 = x.reshape(M, D_in)
    isz = x.dtype.itemsize

    # D_out tile: keep the whole weight resident if it fits the per-block budget
    # (v7x-safe), otherwise stream 128-aligned column blocks of it.
    bn = _pick_tile(D_out, max(1, _LIN_BLOCK_BUDGET // (D_in * isz)), 2048, 128)
    # M tile: bounded by both the x block (bm, D_in) and the out block (bm, bn).
    bm_budget = min(max(1, _LIN_BLOCK_BUDGET // (D_in * isz)),
                    max(1, _LIN_BLOCK_BUDGET // (bn * isz)))
    bm = _pick_tile(M, bm_budget, 1024, 8)

    grid = (pl.cdiv(M, bm), pl.cdiv(D_out, bn))
    cost = pl.CostEstimate(
        flops=2 * M * D_in * D_out,
        transcendentals=0,
        bytes_accessed=isz * (M * D_in + D_out * D_in + M * D_out),
    )
    y = pl.pallas_call(
        functools.partial(_linear_kernel, scale=scale),
        out_shape=jax.ShapeDtypeStruct((M, D_out), x.dtype),
        grid=grid,
        in_specs=[
            pl.BlockSpec((bm, D_in), lambda i, j: (i, 0)),
            # TODO(synk): with a constant index map (single weight block),
            # pipeline_mode=pl.Buffered(1) would halve the resident weight's VMEM
            # footprint; left at default buffering for portability.
            pl.BlockSpec((bn, D_in), lambda i, j: (j, 0)),
        ],
        out_specs=pl.BlockSpec((bm, bn), lambda i, j: (i, j)),
        compiler_params=pltpu.CompilerParams(
            dimension_semantics=("parallel", "parallel"),
            vmem_limit_bytes=_VMEM_LIMIT,
        ),
        cost_estimate=cost,
    )(x2, w)
    return y.reshape(B, S, D_out)


# ---------------------------------------------------------------------------
# Flash-style scaled dot-product attention, all heads of one batch element per
# (batch, q-block) pair, streaming over kv blocks.
# ---------------------------------------------------------------------------
def _attn_accumulate(vl_ref, q_ref, o_ref, m_sc, l_sc, acc_sc, k_cols, v_cols,
                     bkv, num_heads, head_dim):
    b = pl.program_id(0)
    kvi = pl.program_id(2)

    @pl.when(kvi == 0)
    def _init():
        m_sc[...] = jnp.full(m_sc.shape, -jnp.inf, jnp.float32)
        l_sc[...] = jnp.zeros(l_sc.shape, jnp.float32)
        acc_sc[...] = jnp.zeros(acc_sc.shape, jnp.float32)

    q = q_ref[0]                                            # (bq, D); 1/sqrt(dh) pre-folded
    bq = q.shape[0]
    vl = vl_ref[b]                                          # per-batch valid length (SMEM)
    # Same per-batch length applied to every head == torch.repeat_interleave over heads.
    col = kvi * bkv + lax.broadcasted_iota(jnp.int32, (bq, bkv), 1)   # hoisted out of head loop
    masked = col >= vl

    for h in range(num_heads):                              # static unroll over heads
        lo = h * head_dim
        hi = lo + head_dim
        kh = k_cols(lo, hi)                                 # (bkv, dh)
        vh = v_cols(lo, hi)                                 # (bkv, dh)
        s = lax.dot_general(q[:, lo:hi], kh,
                            dimension_numbers=(((1,), (1,)), ((), ())),
                            preferred_element_type=jnp.float32)        # (bq, bkv) f32
        s = jnp.where(masked, jnp.float32(-1e6), s)         # d2l masked_softmax semantics
        m_prev = m_sc[h]                                    # (bq, 1)
        m_new = jnp.maximum(m_prev, jnp.max(s, axis=-1, keepdims=True))
        alpha = jnp.exp(m_prev - m_new)
        p = jnp.exp(s - m_new)
        l_sc[h] = alpha * l_sc[h] + jnp.sum(p, axis=-1, keepdims=True)
        acc_sc[:, lo:hi] = alpha * acc_sc[:, lo:hi] + jnp.dot(
            p.astype(vh.dtype), vh, preferred_element_type=jnp.float32)
        m_sc[h] = m_new
        # TODO(synk): attention-weight dropout omitted (eval-mode identity).

    @pl.when(kvi == pl.num_programs(2) - 1)
    def _finalize():
        for h in range(num_heads):
            lo = h * head_dim
            hi = lo + head_dim
            inv_l = pl.reciprocal(l_sc[h], approx=True)     # EUP slot; ~1e-4 rel. error
            # Per-head direct store (no lane-dim concat / extra full-tile copy).
            o_ref[0, :, lo:hi] = (acc_sc[:, lo:hi] * inv_l).astype(o_ref.dtype)


def _attn_kernel_fused(vl_ref, q_ref, kv_ref, o_ref, m_sc, l_sc, acc_sc, *,
                       num_heads, head_dim, num_hiddens):
    kv = kv_ref[0]                                          # (bkv, 2*D): [K | V] columns
    _attn_accumulate(vl_ref, q_ref, o_ref, m_sc, l_sc, acc_sc,
                     k_cols=lambda lo, hi: kv[:, lo:hi],
                     v_cols=lambda lo, hi: kv[:, num_hiddens + lo:num_hiddens + hi],
                     bkv=kv.shape[0], num_heads=num_heads, head_dim=head_dim)


def _attn_kernel_split(vl_ref, q_ref, k_ref, v_ref, o_ref, m_sc, l_sc, acc_sc, *,
                       num_heads, head_dim):
    k = k_ref[0]
    v = v_ref[0]
    _attn_accumulate(vl_ref, q_ref, o_ref, m_sc, l_sc, acc_sc,
                     k_cols=lambda lo, hi: k[:, lo:hi],
                     v_cols=lambda lo, hi: v[:, lo:hi],
                     bkv=k.shape[0], num_heads=num_heads, head_dim=head_dim)


def _attention(q, vl, *, kv=None, k=None, v=None, num_heads, head_dim):
    B, Sq, D = q.shape
    isz = q.dtype.itemsize
    fused = kv is not None
    if fused:
        Skv, width = kv.shape[1], kv.shape[2]
    else:
        Skv, width = k.shape[1], k.shape[2]

    bq = _attn_q_block(Sq, D, isz)
    bkv = _attn_kv_block(Skv, width, isz)
    grid = (B, pl.cdiv(Sq, bq), Skv // bkv)

    q_spec = pl.BlockSpec((1, bq, D), lambda b, qi, ki, vl_ref: (b, qi, 0))
    out_spec = pl.BlockSpec((1, bq, D), lambda b, qi, ki, vl_ref: (b, qi, 0))
    if fused:
        kernel = functools.partial(_attn_kernel_fused, num_heads=num_heads,
                                   head_dim=head_dim, num_hiddens=D)
        kv_specs = [pl.BlockSpec((1, bkv, width), lambda b, qi, ki, vl_ref: (b, ki, 0))]
        operands = (vl, q, kv)
    else:
        kernel = functools.partial(_attn_kernel_split, num_heads=num_heads,
                                   head_dim=head_dim)
        kv_specs = [pl.BlockSpec((1, bkv, width), lambda b, qi, ki, vl_ref: (b, ki, 0)),
                    pl.BlockSpec((1, bkv, width), lambda b, qi, ki, vl_ref: (b, ki, 0))]
        operands = (vl, q, k, v)

    cost = pl.CostEstimate(
        flops=4 * B * Sq * Skv * D,
        transcendentals=B * num_heads * Sq * Skv,
        bytes_accessed=isz * (2 * B * Sq * D + B * Skv * width * (1 if fused else 2)),
    )
    # TODO(synk): if num_hiddens < 128 (as in the demo), blocks are not lane-dense;
    # pad D to 128 or pack several batch elements per block for production shapes.
    return pl.pallas_call(
        kernel,
        out_shape=jax.ShapeDtypeStruct((B, Sq, D), q.dtype),
        grid_spec=pltpu.PrefetchScalarGridSpec(
            num_scalar_prefetch=1,
            grid=grid,
            in_specs=[q_spec] + kv_specs,
            out_specs=out_spec,
            scratch_shapes=[
                pltpu.VMEM((num_heads, bq, 1), jnp.float32),   # running max per head
                pltpu.VMEM((num_heads, bq, 1), jnp.float32),   # running denom per head
                pltpu.VMEM((bq, D), jnp.float32),              # output accumulator
            ],
        ),
        compiler_params=pltpu.CompilerParams(
            dimension_semantics=("parallel", "parallel", "arbitrary"),
            vmem_limit_bytes=_VMEM_LIMIT,
        ),
        cost_estimate=cost,
    )(*operands)


# ---------------------------------------------------------------------------
# Full module forward.
# ---------------------------------------------------------------------------
def _make_valid_lens(valid_lens, B, Skv):
    if valid_lens is None:
        return jnp.full((B,), Skv, dtype=jnp.int32)
    return valid_lens.astype(jnp.int32)


@functools.partial(jax.jit, static_argnames=("num_heads",))
def _mha_fused_kv(queries, keys, valid_lens, Wq, Wk, Wv, Wo, num_heads):
    B, _, _ = queries.shape
    _, Skv, _ = keys.shape
    num_hiddens = Wq.shape[0]
    head_dim = num_hiddens // num_heads

    # q projection with 1/sqrt(dh) folded into the matmul epilogue.
    q = _pallas_linear(queries, Wq, scale=1.0 / math.sqrt(head_dim))
    # Fused K/V projection: `keys` is read from HBM once; the packed (B, Skv, 2*D)
    # output is consumed directly by the attention kernel (no slicing back).
    # (In a real model the stacked weight would be prepared once, not per call.)
    Wkv = jnp.concatenate([Wk, Wv], axis=0)                 # (2*D, D_in)
    kv = _pallas_linear(keys, Wkv)

    vl = _make_valid_lens(valid_lens, B, Skv)
    attn = _attention(q, vl, kv=kv, num_heads=num_heads, head_dim=head_dim)
    return _pallas_linear(attn, Wo)                         # output projection


@functools.partial(jax.jit, static_argnames=("num_heads",))
def _mha_split(queries, keys, values, valid_lens, Wq, Wk, Wv, Wo, num_heads):
    B, _, _ = queries.shape
    _, Skv, _ = keys.shape
    num_hiddens = Wq.shape[0]
    head_dim = num_hiddens // num_heads

    q = _pallas_linear(queries, Wq, scale=1.0 / math.sqrt(head_dim))
    k = _pallas_linear(keys, Wk)
    v = _pallas_linear(values, Wv)

    vl = _make_valid_lens(valid_lens, B, Skv)
    attn = _attention(q, vl, k=k, v=v, num_heads=num_heads, head_dim=head_dim)
    return _pallas_linear(attn, Wo)


def multi_head_attention(queries, keys, values, valid_lens, Wq, Wk, Wv, Wo,
                         num_heads):
    """Forward pass of the d2l MultiHeadAttention module (bias=False, eval mode)."""
    num_hiddens = Wq.shape[0]
    if num_hiddens % num_heads != 0:
        raise ValueError("num_hiddens must be divisible by num_heads")
    if valid_lens is not None and valid_lens.ndim != 1:
        # TODO(synk): 2-D (per-query) valid_lens is not supported by this kernel.
        raise NotImplementedError("only 1-D valid_lens is supported")
    if keys is values:
        # Common d2l call pattern attention(q, Y, Y, ...): fuse K and V projections.
        # TODO(synk): full QKV fusion for pure self-attention (q is k is v).
        return _mha_fused_kv(queries, keys, valid_lens, Wq, Wk, Wv, Wo,
                             num_heads=num_heads)
    return _mha_split(queries, keys, values, valid_lens, Wq, Wk, Wv, Wo,
                      num_heads=num_heads)


# ---------------------------------------------------------------------------
# Pure-JAX reference (mirrors the PyTorch module in eval mode).
# ---------------------------------------------------------------------------
def _reference_mha(queries, keys, values, valid_lens, Wq, Wk, Wv, Wo, num_heads):
    def lin(x, w):
        return jnp.einsum("bsd,od->bso", x, w)
    q, k, v = lin(queries, Wq), lin(keys, Wk), lin(values, Wv)
    B, Sq, D = q.shape
    H = num_heads
    dh = D // H

    def split_heads(x):
        return x.reshape(x.shape[0], x.shape[1], H, dh).transpose(0, 2, 1, 3)

    qh, kh, vh = split_heads(q), split_heads(k), split_heads(v)
    s = jnp.einsum("bhqd,bhkd->bhqk", qh, kh) / math.sqrt(dh)
    if valid_lens is not None:
        mask = (jnp.arange(kh.shape[2])[None, None, None, :]
                < valid_lens[:, None, None, None])
        s = jnp.where(mask, s, -1e6)
    p = jax.nn.softmax(s, axis=-1)
    o = jnp.einsum("bhqk,bhkd->bhqd", p, vh)
    o = o.transpose(0, 2, 1, 3).reshape(B, Sq, D)
    return lin(o, Wo)


# ---------------------------------------------------------------------------
# Demo
# ---------------------------------------------------------------------------
if __name__ == "__main__":
    num_hiddens, num_heads = 32, 4
    B, Sq, Skv = 2, 8, 16

    key = jax.random.PRNGKey(0)
    k1, k2, k3, k4, k5, k6 = jax.random.split(key, 6)

    def init_w(k, out_f, in_f):
        bound = 1.0 / (in_f ** 0.5)
        return jax.random.uniform(k, (out_f, in_f), jnp.float32, -bound, bound)

    # LazyLinear weights, bias=False; in_features = num_hiddens for all inputs.
    Wq = init_w(k1, num_hiddens, num_hiddens)
    Wk = init_w(k2, num_hiddens, num_hiddens)
    Wv = init_w(k3, num_hiddens, num_hiddens)
    Wo = init_w(k4, num_hiddens, num_hiddens)

    queries = jax.random.normal(k5, (B, Sq, num_hiddens), jnp.float32)
    kv_in = jax.random.normal(k6, (B, Skv, num_hiddens), jnp.float32)  # keys is values
    valid_lens = jnp.array([3, 6], dtype=jnp.int32)

    # Fused-KV path (keys is values), masked.
    out = multi_head_attention(queries, kv_in, kv_in, valid_lens,
                               Wq, Wk, Wv, Wo, num_heads=num_heads)
    jax.block_until_ready(out)
    assert out.shape == (B, Sq, num_hiddens)
    ref = _reference_mha(queries, kv_in, kv_in, valid_lens, Wq, Wk, Wv, Wo, num_heads)
    err = float(jnp.max(jnp.abs(out - ref)))
    assert err < 1e-2, f"fused path mismatch vs reference: {err}"

    # Split path (distinct keys / values arrays), unmasked.
    values_in = kv_in + 0.0
    out2 = multi_head_attention(queries, kv_in, values_in, None,
                                Wq, Wk, Wv, Wo, num_heads=num_heads)
    jax.block_until_ready(out2)
    ref2 = _reference_mha(queries, kv_in, values_in, None, Wq, Wk, Wv, Wo, num_heads)
    err2 = float(jnp.max(jnp.abs(out2 - ref2)))
    assert err2 < 1e-2, f"split path mismatch vs reference: {err2}"

    print("KERNEL_OK")
</pallas_src>

<mosaic_0001>
module attributes {stable_mosaic.version = 11 : i64} {
  func.func @_linear_kernel(%arg0: i32, %arg1: i32, %arg2: memref<32x32xf32, #tpu.memory_space<vmem>>, %arg3: memref<64x32xf32, #tpu.memory_space<vmem>>, %arg4: memref<32x64xf32, #tpu.memory_space<vmem>>) attributes {dimension_semantics = [#tpu.dimension_semantics<parallel>, #tpu.dimension_semantics<parallel>], iteration_bounds = array<i64: 1, 1>, scalar_prefetch = 0 : i64, scratch_operands = 0 : i64, tpu.core_type = #tpu.core_type<tc>, window_params = [{transform_indices = @transform_0, window_bounds = array<i64: 32, 32>}, {transform_indices = @transform_1, window_bounds = array<i64: 64, 32>}, {transform_indices = @transform_2, window_bounds = array<i64: 32, 64>}]} {
    %c0 = arith.constant 0 : index
    %c0_0 = arith.constant 0 : index
    %0 = vector.load %arg2[%c0, %c0_0] : memref<32x32xf32, #tpu.memory_space<vmem>>, vector<32x32xf32>
    %c0_1 = arith.constant 0 : index
    %c0_2 = arith.constant 0 : index
    %1 = vector.load %arg3[%c0_1, %c0_2] : memref<64x32xf32, #tpu.memory_space<vmem>>, vector<64x32xf32>
    %cst = arith.constant dense<0.000000e+00> : vector<32x64xf32>
    %2 = tpu.matmul %0, %1, %cst {dimension_numbers = #tpu.dot_dimension_numbers<[1], [1], [0], [0], [0, 0, 1, 0], [], []>} : vector<32x32xf32>, vector<64x32xf32>, vector<32x64xf32> -> vector<32x64xf32>
    %c0_3 = arith.constant 0 : index
    %c0_4 = arith.constant 0 : index
    %3 = vector.load %arg4[%c0_3, %c0_4] : memref<32x64xf32, #tpu.memory_space<vmem>>, vector<32x64xf32>
    tpu.vector_store %arg4[%c0_3, %c0_4], %2 {strides = array<i32>} : memref<32x64xf32, #tpu.memory_space<vmem>>, vector<32x64xf32>,
    return
  }
  func.func @transform_0(%arg0: i32, %arg1: i32) -> (i32, i32) {
    %c0_i32 = arith.constant 0 : i32
    %c0_i32_0 = arith.constant 0 : i32
    return %arg0, %c0_i32 : i32, i32
  }
  func.func @transform_1(%arg0: i32, %arg1: i32) -> (i32, i32) {
    %c0_i32 = arith.constant 0 : i32
    %c0_i32_0 = arith.constant 0 : i32
    return %arg1, %c0_i32 : i32, i32
  }
  func.func @transform_2(%arg0: i32, %arg1: i32) -> (i32, i32) {
    %c0_i32 = arith.constant 0 : i32
    return %arg0, %arg1 : i32, i32
  }
}

module attributes {stable_mosaic.version = 11 : i64} {
  func.func @_attn_kernel_fused(%arg0: i32, %arg1: i32, %arg2: i32, %arg3: memref<2xi32, #tpu.memory_space<smem>>, %arg4: memref<1x8x32xf32, #tpu.memory_space<vmem>>, %arg5: memref<1x16x64xf32, #tpu.memory_space<vmem>>, %arg6: memref<1x8x32xf32, #tpu.memory_space<vmem>>, %arg7: memref<4x8x1xf32, #tpu.memory_space<vmem>>, %arg8: memref<4x8x1xf32, #tpu.memory_space<vmem>>, %arg9: memref<8x32xf32, #tpu.memory_space<vmem>>) attributes {dimension_semantics = [#tpu.dimension_semantics<parallel>, #tpu.dimension_semantics<parallel>, #tpu.dimension_semantics<arbitrary>], iteration_bounds = array<i64: 2, 1, 1>, scalar_prefetch = 1 : i64, scratch_operands = 3 : i64, tpu.core_type = #tpu.core_type<tc>, window_params = [{transform_indices = @transform_0, window_bounds = array<i64: 1, 8, 32>}, {transform_indices = @transform_1, window_bounds = array<i64: 1, 16, 64>}, {transform_indices = @transform_2, window_bounds = array<i64: 1, 8, 32>}]} {
    %c0 = arith.constant 0 : index
    %c0_0 = arith.constant 0 : index
    %c0_1 = arith.constant 0 : index
    %0 = vector.load %arg5[%c0, %c0_0, %c0_1] : memref<1x16x64xf32, #tpu.memory_space<vmem>>, vector<1x16x64xf32>
    %1 = vector.shape_cast %0 : vector<1x16x64xf32> to vector<16x64xf32>
    %c0_i32 = arith.constant 0 : i32
    %2 = arith.cmpi eq, %arg2, %c0_i32 : i32
    %3 = arith.extui %2 : i1 to i32
    %c0_i32_2 = arith.constant 0 : i32
    %4 = arith.cmpi ne, %3, %c0_i32_2 : i32
    scf.if %4 {
      %cst_85 = arith.constant 0xFF800000 : f32
      %154 = vector.broadcast %cst_85 : f32 to vector<4x8x1xf32>
      %c0_86 = arith.constant 0 : index
      %c0_87 = arith.constant 0 : index
      %c0_88 = arith.constant 0 : index
      %155 = vector.load %arg7[%c0_86, %c0_87, %c0_88] : memref<4x8x1xf32, #tpu.memory_space<vmem>>, vector<4x8x1xf32>
      tpu.vector_store %arg7[%c0_86, %c0_87, %c0_88], %154 {strides = array<i32>} : memref<4x8x1xf32, #tpu.memory_space<vmem>>, vector<4x8x1xf32>,
      %cst_89 = arith.constant 0.000000e+00 : f32
      %156 = vector.broadcast %cst_89 : f32 to vector<4x8x1xf32>
      %c0_90 = arith.constant 0 : index
      %c0_91 = arith.constant 0 : index
      %c0_92 = arith.constant 0 : index
      %157 = vector.load %arg8[%c0_90, %c0_91, %c0_92] : memref<4x8x1xf32, #tpu.memory_space<vmem>>, vector<4x8x1xf32>
      tpu.vector_store %arg8[%c0_90, %c0_91, %c0_92], %156 {strides = array<i32>} : memref<4x8x1xf32, #tpu.memory_space<vmem>>, vector<4x8x1xf32>,
      %cst_93 = arith.constant 0.000000e+00 : f32
      %158 = vector.broadcast %cst_93 : f32 to vector<8x32xf32>
      %c0_94 = arith.constant 0 : index
      %c0_95 = arith.constant 0 : index
      %159 = vector.load %arg9[%c0_94, %c0_95] : memref<8x32xf32, #tpu.memory_space<vmem>>, vector<8x32xf32>
      tpu.vector_store %arg9[%c0_94, %c0_95], %158 {strides = array<i32>} : memref<8x32xf32, #tpu.memory_space<vmem>>, vector<8x32xf32>,
    } else {
    }
    %c0_3 = arith.constant 0 : index
    %c0_4 = arith.constant 0 : index
    %c0_5 = arith.constant 0 : index
    %5 = vector.load %arg4[%c0_3, %c0_4, %c0_5] : memref<1x8x32xf32, #tpu.memory_space<vmem>>, vector<1x8x32xf32>
    %6 = vector.shape_cast %5 : vector<1x8x32xf32> to vector<8x32xf32>
    %7 = arith.index_cast %arg0 : i32 to index
    %8 = memref.load %arg3[%7] : memref<2xi32, #tpu.memory_space<smem>>
    %c16_i32 = arith.constant 16 : i32
    %9 = arith.muli %arg2, %c16_i32 : i32
    %10 = tpu.iota {dimensions = array<i32: 1>} : vector<8x16xi32>
    %11 = vector.broadcast %9 : i32 to vector<8x16xi32>
    %12 = arith.addi %11, %10 : vector<8x16xi32>
    %13 = vector.broadcast %8 : i32 to vector<8x16xi32>
    %14 = arith.cmpi sge, %12, %13 : vector<8x16xi32>
    %15 = vector.extract_strided_slice %1 {offsets = [0, 0], sizes = [16, 8], strides = [1, 1]} : vector<16x64xf32> to vector<16x8xf32>
    %16 = vector.extract_strided_slice %1 {offsets = [0, 32], sizes = [16, 8], strides = [1, 1]} : vector<16x64xf32> to vector<16x8xf32>
    %17 = vector.extract_strided_slice %6 {offsets = [0, 0], sizes = [8, 8], strides = [1, 1]} : vector<8x32xf32> to vector<8x8xf32>
    %cst = arith.constant dense<0.000000e+00> : vector<8x16xf32>
    %18 = tpu.matmul %17, %15, %cst {dimension_numbers = #tpu.dot_dimension_numbers<[1], [1], [0], [0], [0, 0, 1, 0], [], []>} : vector<8x8xf32>, vector<16x8xf32>, vector<8x16xf32> -> vector<8x16xf32>
    %cst_6 = arith.constant -1.000000e+06 : f32
    %19 = vector.broadcast %cst_6 : f32 to vector<8x16xf32>
    %20 = arith.select %14, %19, %18 : vector<8x16xi1>, vector<8x16xf32>
    %c0_7 = arith.constant 0 : index
    %c0_8 = arith.constant 0 : index
    %c0_9 = arith.constant 0 : index
    %21 = vector.load %arg7[%c0_7, %c0_8, %c0_9] : memref<4x8x1xf32, #tpu.memory_space<vmem>>, vector<1x8x1xf32>
    %22 = vector.shape_cast %21 : vector<1x8x1xf32> to vector<8x1xf32>
    %cst_10 = arith.constant dense<0xFF800000> : vector<8xf32>
    %23 = vector.multi_reduction <maximumf>, %20, %cst_10 [1] : vector<8x16xf32> to vector<8xf32>
    %24 = vector.shape_cast %23 : vector<8xf32> to vector<8x1xf32>
    %25 = arith.maximumf %22, %24 : vector<8x1xf32>
    %26 = arith.subf %22, %25 : vector<8x1xf32>
    %27 = math.exp %26 : vector<8x1xf32>
    %28 = vector.broadcast %25 : vector<8x1xf32> to vector<8x16xf32>
    %29 = arith.subf %20, %28 : vector<8x16xf32>
    %30 = math.exp %29 : vector<8x16xf32>
    %c0_11 = arith.constant 0 : index
    %c0_12 = arith.constant 0 : index
    %c0_13 = arith.constant 0 : index
    %31 = vector.load %arg8[%c0_11, %c0_12, %c0_13] : memref<4x8x1xf32, #tpu.memory_space<vmem>>, vector<1x8x1xf32>
    %32 = vector.shape_cast %31 : vector<1x8x1xf32> to vector<8x1xf32>
    %33 = arith.mulf %27, %32 : vector<8x1xf32>
    %cst_14 = arith.constant dense<0.000000e+00> : vector<8xf32>
    %34 = vector.multi_reduction <add>, %30, %cst_14 [1] : vector<8x16xf32> to vector<8xf32>
    %35 = vector.shape_cast %34 : vector<8xf32> to vector<8x1xf32>
    %36 = arith.addf %33, %35 : vector<8x1xf32>
    %c0_15 = arith.constant 0 : index
    %c0_16 = arith.constant 0 : index
    %c0_17 = arith.constant 0 : index
    %37 = vector.load %arg8[%c0_15, %c0_16, %c0_17] : memref<4x8x1xf32, #tpu.memory_space<vmem>>, vector<1x8x1xf32>
    %38 = vector.shape_cast %37 : vector<1x8x1xf32> to vector<8x1xf32>
    %39 = vector.shape_cast %36 : vector<8x1xf32> to vector<1x8x1xf32>
    tpu.vector_store %arg8[%c0_15, %c0_16, %c0_17], %39 {strides = array<i32>} : memref<4x8x1xf32, #tpu.memory_space<vmem>>, vector<1x8x1xf32>,
    %c0_18 = arith.constant 0 : index
    %c0_19 = arith.constant 0 : index
    %40 = vector.load %arg9[%c0_18, %c0_19] : memref<8x32xf32, #tpu.memory_space<vmem>>, vector<8x8xf32>
    %41 = vector.broadcast %27 : vector<8x1xf32> to vector<8x8xf32>
    %42 = arith.mulf %41, %40 : vector<8x8xf32>
    %cst_20 = arith.constant dense<0.000000e+00> : vector<8x8xf32>
    %43 = tpu.matmul %30, %16, %cst_20 {dimension_numbers = #tpu.dot_dimension_numbers<[1], [0], [0], [1], [0, 0, 1, 1], [], []>} : vector<8x16xf32>, vector<16x8xf32>, vector<8x8xf32> -> vector<8x8xf32>
    %44 = arith.addf %42, %43 : vector<8x8xf32>
    %c0_21 = arith.constant 0 : index
    %c0_22 = arith.constant 0 : index
    %45 = vector.load %arg9[%c0_21, %c0_22] : memref<8x32xf32, #tpu.memory_space<vmem>>, vector<8x8xf32>
    tpu.vector_store %arg9[%c0_21, %c0_22], %44 {strides = array<i32>} : memref<8x32xf32, #tpu.memory_space<vmem>>, vector<8x8xf32>,
    %c0_23 = arith.constant 0 : index
    %c0_24 = arith.constant 0 : index
    %c0_25 = arith.constant 0 : index
    %46 = vector.load %arg7[%c0_23, %c0_24, %c0_25] : memref<4x8x1xf32, #tpu.memory_space<vmem>>, vector<1x8x1xf32>
    %47 = vector.shape_cast %46 : vector<1x8x1xf32> to vector<8x1xf32>
    %48 = vector.shape_cast %25 : vector<8x1xf32> to vector<1x8x1xf32>
    tpu.vector_store %arg7[%c0_23, %c0_24, %c0_25], %48 {strides = array<i32>} : memref<4x8x1xf32, #tpu.memory_space<vmem>>, vector<1x8x1xf32>,
    %49 = vector.extract_strided_slice %1 {offsets = [0, 8], sizes = [16, 8], strides = [1, 1]} : vector<16x64xf32> to vector<16x8xf32>
    %50 = vector.extract_strided_slice %1 {offsets = [0, 40], sizes = [16, 8], strides = [1, 1]} : vector<16x64xf32> to vector<16x8xf32>
    %51 = vector.extract_strided_slice %6 {offsets = [0, 8], sizes = [8, 8], strides = [1, 1]} : vector<8x32xf32> to vector<8x8xf32>
    %cst_26 = arith.constant dense<0.000000e+00> : vector<8x16xf32>
    %52 = tpu.matmul %51, %49, %cst_26 {dimension_numbers = #tpu.dot_dimension_numbers<[1], [1], [0], [0], [0, 0, 1, 0], [], []>} : vector<8x8xf32>, vector<16x8xf32>, vector<8x16xf32> -> vector<8x16xf32>
    %cst_27 = arith.constant -1.000000e+06 : f32
    %53 = vector.broadcast %cst_27 : f32 to vector<8x16xf32>
    %54 = arith.select %14, %53, %52 : vector<8x16xi1>, vector<8x16xf32>
    %c1 = arith.constant 1 : index
    %c0_28 = arith.constant 0 : index
    %c0_29 = arith.constant 0 : index
    %55 = vector.load %arg7[%c1, %c0_28, %c0_29] : memref<4x8x1xf32, #tpu.memory_space<vmem>>, vector<1x8x1xf32>
    %56 = vector.shape_cast %55 : vector<1x8x1xf32> to vector<8x1xf32>
    %cst_30 = arith.constant dense<0xFF800000> : vector<8xf32>
    %57 = vector.multi_reduction <maximumf>, %54, %cst_30 [1] : vector<8x16xf32> to vector<8xf32>
    %58 = vector.shape_cast %57 : vector<8xf32> to vector<8x1xf32>
    %59 = arith.maximumf %56, %58 : vector<8x1xf32>
    %60 = arith.subf %56, %59 : vector<8x1xf32>
    %61 = math.exp %60 : vector<8x1xf32>
    %62 = vector.broadcast %59 : vector<8x1xf32> to vector<8x16xf32>
    %63 = arith.subf %54, %62 : vector<8x16xf32>
    %64 = math.exp %63 : vector<8x16xf32>
    %c1_31 = arith.constant 1 : index
    %c0_32 = arith.constant 0 : index
    %c0_33 = arith.constant 0 : index
    %65 = vector.load %arg8[%c1_31, %c0_32, %c0_33] : memref<4x8x1xf32, #tpu.memory_space<vmem>>, vector<1x8x1xf32>
    %66 = vector.shape_cast %65 : vector<1x8x1xf32> to vector<8x1xf32>
    %67 = arith.mulf %61, %66 : vector<8x1xf32>
    %cst_34 = arith.constant dense<0.000000e+00> : vector<8xf32>
    %68 = vector.multi_reduction <add>, %64, %cst_34 [1] : vector<8x16xf32> to vector<8xf32>
    %69 = vector.shape_cast %68 : vector<8xf32> to vector<8x1xf32>
    %70 = arith.addf %67, %69 : vector<8x1xf32>
    %c1_35 = arith.constant 1 : index
    %c0_36 = arith.constant 0 : index
    %c0_37 = arith.constant 0 : index
    %71 = vector.load %arg8[%c1_35, %c0_36, %c0_37] : memref<4x8x1xf32, #tpu.memory_space<vmem>>, vector<1x8x1xf32>
    %72 = vector.shape_cast %71 : vector<1x8x1xf32> to vector<8x1xf32>
    %73 = vector.shape_cast %70 : vector<8x1xf32> to vector<1x8x1xf32>
    tpu.vector_store %arg8[%c1_35, %c0_36, %c0_37], %73 {strides = array<i32>} : memref<4x8x1xf32, #tpu.memory_space<vmem>>, vector<1x8x1xf32>,
    %c0_38 = arith.constant 0 : index
    %c8 = arith.constant 8 : index
    %74 = vector.load %arg9[%c0_38, %c8] : memref<8x32xf32, #tpu.memory_space<vmem>>, vector<8x8xf32>
    %75 = vector.broadcast %61 : vector<8x1xf32> to vector<8x8xf32>
    %76 = arith.mulf %75, %74 : vector<8x8xf32>
    %cst_39 = arith.constant dense<0.000000e+00> : vector<8x8xf32>
    %77 = tpu.matmul %64, %50, %cst_39 {dimension_numbers = #tpu.dot_dimension_numbers<[1], [0], [0], [1], [0, 0, 1, 1], [], []>} : vector<8x16xf32>, vector<16x8xf32>, vector<8x8xf32> -> vector<8x8xf32>
    %78 = arith.addf %76, %77 : vector<8x8xf32>
    %c0_40 = arith.constant 0 : index
    %c8_41 = arith.constant 8 : index
    %79 = vector.load %arg9[%c0_40, %c8_41] : memref<8x32xf32, #tpu.memory_space<vmem>>, vector<8x8xf32>
    tpu.vector_store %arg9[%c0_40, %c8_41], %78 {strides = array<i32>} : memref<8x32xf32, #tpu.memory_space<vmem>>, vector<8x8xf32>,
    %c1_42 = arith.constant 1 : index
    %c0_43 = arith.constant 0 : index
    %c0_44 = arith.constant 0 : index
    %80 = vector.load %arg7[%c1_42, %c0_43, %c0_44] : memref<4x8x1xf32, #tpu.memory_space<vmem>>, vector<1x8x1xf32>
    %81 = vector.shape_cast %80 : vector<1x8x1xf32> to vector<8x1xf32>
    %82 = vector.shape_cast %59 : vector<8x1xf32> to vector<1x8x1xf32>
    tpu.vector_store %arg7[%c1_42, %c0_43, %c0_44], %82 {strides = array<i32>} : memref<4x8x1xf32, #tpu.memory_space<vmem>>, vector<1x8x1xf32>,
    %83 = vector.extract_strided_slice %1 {offsets = [0, 16], sizes = [16, 8], strides = [1, 1]} : vector<16x64xf32> to vector<16x8xf32>
    %84 = vector.extract_strided_slice %1 {offsets = [0, 48], sizes = [16, 8], strides = [1, 1]} : vector<16x64xf32> to vector<16x8xf32>
    %85 = vector.extract_strided_slice %6 {offsets = [0, 16], sizes = [8, 8], strides = [1, 1]} : vector<8x32xf32> to vector<8x8xf32>
    %cst_45 = arith.constant dense<0.000000e+00> : vector<8x16xf32>
    %86 = tpu.matmul %85, %83, %cst_45 {dimension_numbers = #tpu.dot_dimension_numbers<[1], [1], [0], [0], [0, 0, 1, 0], [], []>} : vector<8x8xf32>, vector<16x8xf32>, vector<8x16xf32> -> vector<8x16xf32>
    %cst_46 = arith.constant -1.000000e+06 : f32
    %87 = vector.broadcast %cst_46 : f32 to vector<8x16xf32>
    %88 = arith.select %14, %87, %86 : vector<8x16xi1>, vector<8x16xf32>
    %c2 = arith.constant 2 : index
    %c0_47 = arith.constant 0 : index
    %c0_48 = arith.constant 0 : index
    %89 = vector.load %arg7[%c2, %c0_47, %c0_48] : memref<4x8x1xf32, #tpu.memory_space<vmem>>, vector<1x8x1xf32>
    %90 = vector.shape_cast %89 : vector<1x8x1xf32> to vector<8x1xf32>
    %cst_49 = arith.constant dense<0xFF800000> : vector<8xf32>
    %91 = vector.multi_reduction <maximumf>, %88, %cst_49 [1] : vector<8x16xf32> to vector<8xf32>
    %92 = vector.shape_cast %91 : vector<8xf32> to vector<8x1xf32>
    %93 = arith.maximumf %90, %92 : vector<8x1xf32>
    %94 = arith.subf %90, %93 : vector<8x1xf32>
    %95 = math.exp %94 : vector<8x1xf32>
    %96 = vector.broadcast %93 : vector<8x1xf32> to vector<8x16xf32>
    %97 = arith.subf %88, %96 : vector<8x16xf32>
    %98 = math.exp %97 : vector<8x16xf32>
    %c2_50 = arith.constant 2 : index
    %c0_51 = arith.constant 0 : index
    %c0_52 = arith.constant 0 : index
    %99 = vector.load %arg8[%c2_50, %c0_51, %c0_52] : memref<4x8x1xf32, #tpu.memory_space<vmem>>, vector<1x8x1xf32>
    %100 = vector.shape_cast %99 : vector<1x8x1xf32> to vector<8x1xf32>
    %101 = arith.mulf %95, %100 : vector<8x1xf32>
    %cst_53 = arith.constant dense<0.000000e+00> : vector<8xf32>
    %102 = vector.multi_reduction <add>, %98, %cst_53 [1] : vector<8x16xf32> to vector<8xf32>
    %103 = vector.shape_cast %102 : vector<8xf32> to vector<8x1xf32>
    %104 = arith.addf %101, %103 : vector<8x1xf32>
    %c2_54 = arith.constant 2 : index
    %c0_55 = arith.constant 0 : index
    %c0_56 = arith.constant 0 : index
    %105 = vector.load %arg8[%c2_54, %c0_55, %c0_56] : memref<4x8x1xf32, #tpu.memory_space<vmem>>, vector<1x8x1xf32>
    %106 = vector.shape_cast %105 : vector<1x8x1xf32> to vector<8x1xf32>
    %107 = vector.shape_cast %104 : vector<8x1xf32> to vector<1x8x1xf32>
    tpu.vector_store %arg8[%c2_54, %c0_55, %c0_56], %107 {strides = array<i32>} : memref<4x8x1xf32, #tpu.memory_space<vmem>>, vector<1x8x1xf32>,
    %c0_57 = arith.constant 0 : index
    %c16 = arith.constant 16 : index
    %108 = vector.load %arg9[%c0_57, %c16] : memref<8x32xf32, #tpu.memory_space<vmem>>, vector<8x8xf32>
    %109 = vector.broadcast %95 : vector<8x1xf32> to vector<8x8xf32>
    %110 = arith.mulf %109, %108 : vector<8x8xf32>
    %cst_58 = arith.constant dense<0.000000e+00> : vector<8x8xf32>
    %111 = tpu.matmul %98, %84, %cst_58 {dimension_numbers = #tpu.dot_dimension_numbers<[1], [0], [0], [1], [0, 0, 1, 1], [], []>} : vector<8x16xf32>, vector<16x8xf32>, vector<8x8xf32> -> vector<8x8xf32>
    %112 = arith.addf %110, %111 : vector<8x8xf32>
    %c0_59 = arith.constant 0 : index
    %c16_60 = arith.constant 16 : index
    %113 = vector.load %arg9[%c0_59, %c16_60] : memref<8x32xf32, #tpu.memory_space<vmem>>, vector<8x8xf32>
    tpu.vector_store %arg9[%c0_59, %c16_60], %112 {strides = array<i32>} : memref<8x32xf32, #tpu.memory_space<vmem>>, vector<8x8xf32>,
    %c2_61 = arith.constant 2 : index
    %c0_62 = arith.constant 0 : index
    %c0_63 = arith.constant 0 : index
    %114 = vector.load %arg7[%c2_61, %c0_62, %c0_63] : memref<4x8x1xf32, #tpu.memory_space<vmem>>, vector<1x8x1xf32>
    %115 = vector.shape_cast %114 : vector<1x8x1xf32> to vector<8x1xf32>
    %116 = vector.shape_cast %93 : vector<8x1xf32> to vector<1x8x1xf32>
    tpu.vector_store %arg7[%c2_61, %c0_62, %c0_63], %116 {strides = array<i32>} : memref<4x8x1xf32, #tpu.memory_space<vmem>>, vector<1x8x1xf32>,
    %117 = vector.extract_strided_slice %1 {offsets = [0, 24], sizes = [16, 8], strides = [1, 1]} : vector<16x64xf32> to vector<16x8xf32>
    %118 = vector.extract_strided_slice %1 {offsets = [0, 56], sizes = [16, 8], strides = [1, 1]} : vector<16x64xf32> to vector<16x8xf32>
    %119 = vector.extract_strided_slice %6 {offsets = [0, 24], sizes = [8, 8], strides = [1, 1]} : vector<8x32xf32> to vector<8x8xf32>
    %cst_64 = arith.constant dense<0.000000e+00> : vector<8x16xf32>
    %120 = tpu.matmul %119, %117, %cst_64 {dimension_numbers = #tpu.dot_dimension_numbers<[1], [1], [0], [0], [0, 0, 1, 0], [], []>} : vector<8x8xf32>, vector<16x8xf32>, vector<8x16xf32> -> vector<8x16xf32>
    %cst_65 = arith.constant -1.000000e+06 : f32
    %121 = vector.broadcast %cst_65 : f32 to vector<8x16xf32>
    %122 = arith.select %14, %121, %120 : vector<8x16xi1>, vector<8x16xf32>
    %c3 = arith.constant 3 : index
    %c0_66 = arith.constant 0 : index
    %c0_67 = arith.constant 0 : index
    %123 = vector.load %arg7[%c3, %c0_66, %c0_67] : memref<4x8x1xf32, #tpu.memory_space<vmem>>, vector<1x8x1xf32>
    %124 = vector.shape_cast %123 : vector<1x8x1xf32> to vector<8x1xf32>
    %cst_68 = arith.constant dense<0xFF800000> : vector<8xf32>
    %125 = vector.multi_reduction <maximumf>, %122, %cst_68 [1] : vector<8x16xf32> to vector<8xf32>
    %126 = vector.shape_cast %125 : vector<8xf32> to vector<8x1xf32>
    %127 = arith.maximumf %124, %126 : vector<8x1xf32>
    %128 = arith.subf %124, %127 : vector<8x1xf32>
    %129 = math.exp %128 : vector<8x1xf32>
    %130 = vector.broadcast %127 : vector<8x1xf32> to vector<8x16xf32>
    %131 = arith.subf %122, %130 : vector<8x16xf32>
    %132 = math.exp %131 : vector<8x16xf32>
    %c3_69 = arith.constant 3 : index
    %c0_70 = arith.constant 0 : index
    %c0_71 = arith.constant 0 : index
    %133 = vector.load %arg8[%c3_69, %c0_70, %c0_71] : memref<4x8x1xf32, #tpu.memory_space<vmem>>, vector<1x8x1xf32>
    %134 = vector.shape_cast %133 : vector<1x8x1xf32> to vector<8x1xf32>
    %135 = arith.mulf %129, %134 : vector<8x1xf32>
    %cst_72 = arith.constant dense<0.000000e+00> : vector<8xf32>
    %136 = vector.multi_reduction <add>, %132, %cst_72 [1] : vector<8x16xf32> to vector<8xf32>
    %137 = vector.shape_cast %136 : vector<8xf32> to vector<8x1xf32>
    %138 = arith.addf %135, %137 : vector<8x1xf32>
    %c3_73 = arith.constant 3 : index
    %c0_74 = arith.constant 0 : index
    %c0_75 = arith.constant 0 : index
    %139 = vector.load %arg8[%c3_73, %c0_74, %c0_75] : memref<4x8x1xf32, #tpu.memory_space<vmem>>, vector<1x8x1xf32>
    %140 = vector.shape_cast %139 : vector<1x8x1xf32> to vector<8x1xf32>
    %141 = vector.shape_cast %138 : vector<8x1xf32> to vector<1x8x1xf32>
    tpu.vector_store %arg8[%c3_73, %c0_74, %c0_75], %141 {strides = array<i32>} : memref<4x8x1xf32, #tpu.memory_space<vmem>>, vector<1x8x1xf32>,
    %c0_76 = arith.constant 0 : index
    %c24 = arith.constant 24 : index
    %142 = vector.load %arg9[%c0_76, %c24] : memref<8x32xf32, #tpu.memory_space<vmem>>, vector<8x8xf32>
    %143 = vector.broadcast %129 : vector<8x1xf32> to vector<8x8xf32>
    %144 = arith.mulf %143, %142 : vector<8x8xf32>
    %cst_77 = arith.constant dense<0.000000e+00> : vector<8x8xf32>
    %145 = tpu.matmul %132, %118, %cst_77 {dimension_numbers = #tpu.dot_dimension_numbers<[1], [0], [0], [1], [0, 0, 1, 1], [], []>} : vector<8x16xf32>, vector<16x8xf32>, vector<8x8xf32> -> vector<8x8xf32>
    %146 = arith.addf %144, %145 : vector<8x8xf32>
    %c0_78 = arith.constant 0 : index
    %c24_79 = arith.constant 24 : index
    %147 = vector.load %arg9[%c0_78, %c24_79] : memref<8x32xf32, #tpu.memory_space<vmem>>, vector<8x8xf32>
    tpu.vector_store %arg9[%c0_78, %c24_79], %146 {strides = array<i32>} : memref<8x32xf32, #tpu.memory_space<vmem>>, vector<8x8xf32>,
    %c3_80 = arith.constant 3 : index
    %c0_81 = arith.constant 0 : index
    %c0_82 = arith.constant 0 : index
    %148 = vector.load %arg7[%c3_80, %c0_81, %c0_82] : memref<4x8x1xf32, #tpu.memory_space<vmem>>, vector<1x8x1xf32>
    %149 = vector.shape_cast %148 : vector<1x8x1xf32> to vector<8x1xf32>
    %150 = vector.shape_cast %127 : vector<8x1xf32> to vector<1x8x1xf32>
    tpu.vector_store %arg7[%c3_80, %c0_81, %c0_82], %150 {strides = array<i32>} : memref<4x8x1xf32, #tpu.memory_space<vmem>>, vector<1x8x1xf32>,
    %c0_i32_83 = arith.constant 0 : i32
    %151 = arith.cmpi eq, %arg2, %c0_i32_83 : i32
    %152 = arith.extui %151 : i1 to i32
    %c0_i32_84 = arith.constant 0 : i32
    %153 = arith.cmpi ne, %152, %c0_i32_84 : i32
    scf.if %153 {
      %c0_85 = arith.constant 0 : index
      %c0_86 = arith.constant 0 : index
      %c0_87 = arith.constant 0 : index
      %154 = vector.load %arg8[%c0_85, %c0_86, %c0_87] : memref<4x8x1xf32, #tpu.memory_space<vmem>>, vector<1x8x1xf32>
      %155 = vector.shape_cast %154 : vector<1x8x1xf32> to vector<8x1xf32>
      %156 = tpu.reciprocal %155 {approx = true} : vector<8x1xf32> -> vector<8x1xf32>
      %c0_88 = arith.constant 0 : index
      %c0_89 = arith.constant 0 : index
      %157 = vector.load %arg9[%c0_88, %c0_89] : memref<8x32xf32, #tpu.memory_space<vmem>>, vector<8x8xf32>
      %158 = vector.broadcast %156 : vector<8x1xf32> to vector<8x8xf32>
      %159 = arith.mulf %157, %158 : vector<8x8xf32>
      %c0_90 = arith.constant 0 : index
      %c0_91 = arith.constant 0 : index
      %c0_92 = arith.constant 0 : index
      %160 = vector.load %arg6[%c0_90, %c0_91, %c0_92] : memref<1x8x32xf32, #tpu.memory_space<vmem>>, vector<1x8x8xf32>
      %161 = vector.shape_cast %160 : vector<1x8x8xf32> to vector<8x8xf32>
      %162 = vector.shape_cast %159 : vector<8x8xf32> to vector<1x8x8xf32>
      tpu.vector_store %arg6[%c0_90, %c0_91, %c0_92], %162 {strides = array<i32>} : memref<1x8x32xf32, #tpu.memory_space<vmem>>, vector<1x8x8xf32>,
      %c1_93 = arith.constant 1 : index
      %c0_94 = arith.constant 0 : index
      %c0_95 = arith.constant 0 : index
      %163 = vector.load %arg8[%c1_93, %c0_94, %c0_95] : memref<4x8x1xf32, #tpu.memory_space<vmem>>, vector<1x8x1xf32>
      %164 = vector.shape_cast %163 : vector<1x8x1xf32> to vector<8x1xf32>
      %165 = tpu.reciprocal %164 {approx = true} : vector<8x1xf32> -> vector<8x1xf32>
      %c0_96 = arith.constant 0 : index
      %c8_97 = arith.constant 8 : index
      %166 = vector.load %arg9[%c0_96, %c8_97] : memref<8x32xf32, #tpu.memory_space<vmem>>, vector<8x8xf32>
      %167 = vector.broadcast %165 : vector<8x1xf32> to vector<8x8xf32>
      %168 = arith.mulf %166, %167 : vector<8x8xf32>
      %c0_98 = arith.constant 0 : index
      %c0_99 = arith.constant 0 : index
      %c8_100 = arith.constant 8 : index
      %169 = vector.load %arg6[%c0_98, %c0_99, %c8_100] : memref<1x8x32xf32, #tpu.memory_space<vmem>>, vector<1x8x8xf32>
      %170 = vector.shape_cast %169 : vector<1x8x8xf32> to vector<8x8xf32>
      %171 = vector.shape_cast %168 : vector<8x8xf32> to vector<1x8x8xf32>
      tpu.vector_store %arg6[%c0_98, %c0_99, %c8_100], %171 {strides = array<i32>} : memref<1x8x32xf32, #tpu.memory_space<vmem>>, vector<1x8x8xf32>,
      %c2_101 = arith.constant 2 : index
      %c0_102 = arith.constant 0 : index
      %c0_103 = arith.constant 0 : index
      %172 = vector.load %arg8[%c2_101, %c0_102, %c0_103] : memref<4x8x1xf32, #tpu.memory_space<vmem>>, vector<1x8x1xf32>
      %173 = vector.shape_cast %172 : vector<1x8x1xf32> to vector<8x1xf32>
      %174 = tpu.reciprocal %173 {approx = true} : vector<8x1xf32> -> vector<8x1xf32>
      %c0_104 = arith.constant 0 : index
      %c16_105 = arith.constant 16 : index
      %175 = vector.load %arg9[%c0_104, %c16_105] : memref<8x32xf32, #tpu.memory_space<vmem>>, vector<8x8xf32>
      %176 = vector.broadcast %174 : vector<8x1xf32> to vector<8x8xf32>
      %177 = arith.mulf %175, %176 : vector<8x8xf32>
      %c0_106 = arith.constant 0 : index
      %c0_107 = arith.constant 0 : index
      %c16_108 = arith.constant 16 : index
      %178 = vector.load %arg6[%c0_106, %c0_107, %c16_108] : memref<1x8x32xf32, #tpu.memory_space<vmem>>, vector<1x8x8xf32>
      %179 = vector.shape_cast %178 : vector<1x8x8xf32> to vector<8x8xf32>
      %180 = vector.shape_cast %177 : vector<8x8xf32> to vector<1x8x8xf32>
      tpu.vector_store %arg6[%c0_106, %c0_107, %c16_108], %180 {strides = array<i32>} : memref<1x8x32xf32, #tpu.memory_space<vmem>>, vector<1x8x8xf32>,
      %c3_109 = arith.constant 3 : index
      %c0_110 = arith.constant 0 : index
      %c0_111 = arith.constant 0 : index
      %181 = vector.load %arg8[%c3_109, %c0_110, %c0_111] : memref<4x8x1xf32, #tpu.memory_space<vmem>>, vector<1x8x1xf32>
      %182 = vector.shape_cast %181 : vector<1x8x1xf32> to vector<8x1xf32>
      %183 = tpu.reciprocal %182 {approx = true} : vector<8x1xf32> -> vector<8x1xf32>
      %c0_112 = arith.constant 0 : index
      %c24_113 = arith.constant 24 : index
      %184 = vector.load %arg9[%c0_112, %c24_113] : memref<8x32xf32, #tpu.memory_space<vmem>>, vector<8x8xf32>
      %185 = vector.broadcast %183 : vector<8x1xf32> to vector<8x8xf32>
      %186 = arith.mulf %184, %185 : vector<8x8xf32>
      %c0_114 = arith.constant 0 : index
      %c0_115 = arith.constant 0 : index
      %c24_116 = arith.constant 24 : index
      %187 = vector.load %arg6[%c0_114, %c0_115, %c24_116] : memref<1x8x32xf32, #tpu.memory_space<vmem>>, vector<1x8x8xf32>
      %188 = vector.shape_cast %187 : vector<1x8x8xf32> to vector<8x8xf32>
      %189 = vector.shape_cast %186 : vector<8x8xf32> to vector<1x8x8xf32>
      tpu.vector_store %arg6[%c0_114, %c0_115, %c24_116], %189 {strides = array<i32>} : memref<1x8x32xf32, #tpu.memory_space<vmem>>, vector<1x8x8xf32>,
    } else {
    }
    return
  }
  func.func @transform_0(%arg0: i32, %arg1: i32, %arg2: i32, %arg3: memref<2xi32, #tpu.memory_space<smem>>) -> (i32, i32, i32) {
    %c0_i32 = arith.constant 0 : i32
    %c0_i32_0 = arith.constant 0 : i32
    return %arg0, %arg1, %c0_i32 : i32, i32, i32
  }
  func.func @transform_1(%arg0: i32, %arg1: i32, %arg2: i32, %arg3: memref<2xi32, #tpu.memory_space<smem>>) -> (i32, i32, i32) {
    %c0_i32 = arith.constant 0 : i32
    %c0_i32_0 = arith.constant 0 : i32
    return %arg0, %arg2, %c0_i32 : i32, i32, i32
  }
  func.func @transform_2(%arg0: i32, %arg1: i32, %arg2: i32, %arg3: memref<2xi32, #tpu.memory_space<smem>>) -> (i32, i32, i32) {
    %c0_i32 = arith.constant 0 : i32
    %c0_i32_0 = arith.constant 0 : i32
    return %arg0, %arg1, %c0_i32 : i32, i32, i32
  }
}

module attributes {stable_mosaic.version = 11 : i64} {
  func.func @_linear_kernel(%arg0: i32, %arg1: i32, %arg2: memref<16x32xf32, #tpu.memory_space<vmem>>, %arg3: memref<32x32xf32, #tpu.memory_space<vmem>>, %arg4: memref<16x32xf32, #tpu.memory_space<vmem>>) attributes {dimension_semantics = [#tpu.dimension_semantics<parallel>, #tpu.dimension_semantics<parallel>], iteration_bounds = array<i64: 1, 1>, scalar_prefetch = 0 : i64, scratch_operands = 0 : i64, tpu.core_type = #tpu.core_type<tc>, window_params = [{transform_indices = @transform_0, window_bounds = array<i64: 16, 32>}, {transform_indices = @transform_1, window_bounds = array<i64: 32, 32>}, {transform_indices = @transform_2, window_bounds = array<i64: 16, 32>}]} {
    %c0 = arith.constant 0 : index
    %c0_0 = arith.constant 0 : index
    %0 = vector.load %arg2[%c0, %c0_0] : memref<16x32xf32, #tpu.memory_space<vmem>>, vector<16x32xf32>
    %c0_1 = arith.constant 0 : index
    %c0_2 = arith.constant 0 : index
    %1 = vector.load %arg3[%c0_1, %c0_2] : memref<32x32xf32, #tpu.memory_space<vmem>>, vector<32x32xf32>
    %cst = arith.constant dense<0.000000e+00> : vector<16x32xf32>
    %2 = tpu.matmul %0, %1, %cst {dimension_numbers = #tpu.dot_dimension_numbers<[1], [1], [0], [0], [0, 0, 1, 0], [], []>} : vector<16x32xf32>, vector<32x32xf32>, vector<16x32xf32> -> vector<16x32xf32>
    %cst_3 = arith.constant 0.353553385 : f32
    %3 = vector.broadcast %cst_3 : f32 to vector<16x32xf32>
    %4 = arith.mulf %2, %3 : vector<16x32xf32>
    %c0_4 = arith.constant 0 : index
    %c0_5 = arith.constant 0 : index
    %5 = vector.load %arg4[%c0_4, %c0_5] : memref<16x32xf32, #tpu.memory_space<vmem>>, vector<16x32xf32>
    tpu.vector_store %arg4[%c0_4, %c0_5], %4 {strides = array<i32>} : memref<16x32xf32, #tpu.memory_space<vmem>>, vector<16x32xf32>,
    return
  }
  func.func @transform_0(%arg0: i32, %arg1: i32) -> (i32, i32) {
    %c0_i32 = arith.constant 0 : i32
    %c0_i32_0 = arith.constant 0 : i32
    return %arg0, %c0_i32 : i32, i32
  }
  func.func @transform_1(%arg0: i32, %arg1: i32) -> (i32, i32) {
    %c0_i32 = arith.constant 0 : i32
    %c0_i32_0 = arith.constant 0 : i32
    return %arg1, %c0_i32 : i32, i32
  }
  func.func @transform_2(%arg0: i32, %arg1: i32) -> (i32, i32) {
    %c0_i32 = arith.constant 0 : i32
    return %arg0, %arg1 : i32, i32
  }
}

module attributes {stable_mosaic.version = 11 : i64} {
  func.func @_linear_kernel(%arg0: i32, %arg1: i32, %arg2: memref<16x32xf32, #tpu.memory_space<vmem>>, %arg3: memref<32x32xf32, #tpu.memory_space<vmem>>, %arg4: memref<16x32xf32, #tpu.memory_space<vmem>>) attributes {dimension_semantics = [#tpu.dimension_semantics<parallel>, #tpu.dimension_semantics<parallel>], iteration_bounds = array<i64: 1, 1>, scalar_prefetch = 0 : i64, scratch_operands = 0 : i64, tpu.core_type = #tpu.core_type<tc>, window_params = [{transform_indices = @transform_0, window_bounds = array<i64: 16, 32>}, {transform_indices = @transform_1, window_bounds = array<i64: 32, 32>}, {transform_indices = @transform_2, window_bounds = array<i64: 16, 32>}]} {
    %c0 = arith.constant 0 : index
    %c0_0 = arith.constant 0 : index
    %0 = vector.load %arg2[%c0, %c0_0] : memref<16x32xf32, #tpu.memory_space<vmem>>, vector<16x32xf32>
    %c0_1 = arith.constant 0 : index
    %c0_2 = arith.constant 0 : index
    %1 = vector.load %arg3[%c0_1, %c0_2] : memref<32x32xf32, #tpu.memory_space<vmem>>, vector<32x32xf32>
    %cst = arith.constant dense<0.000000e+00> : vector<16x32xf32>
    %2 = tpu.matmul %0, %1, %cst {dimension_numbers = #tpu.dot_dimension_numbers<[1], [1], [0], [0], [0, 0, 1, 0], [], []>} : vector<16x32xf32>, vector<32x32xf32>, vector<16x32xf32> -> vector<16x32xf32>
    %c0_3 = arith.constant 0 : index
    %c0_4 = arith.constant 0 : index
    %3 = vector.load %arg4[%c0_3, %c0_4] : memref<16x32xf32, #tpu.memory_space<vmem>>, vector<16x32xf32>
    tpu.vector_store %arg4[%c0_3, %c0_4], %2 {strides = array<i32>} : memref<16x32xf32, #tpu.memory_space<vmem>>, vector<16x32xf32>,
    return
  }
  func.func @transform_0(%arg0: i32, %arg1: i32) -> (i32, i32) {
    %c0_i32 = arith.constant 0 : i32
    %c0_i32_0 = arith.constant 0 : i32
    return %arg0, %c0_i32 : i32, i32
  }
  func.func @transform_1(%arg0: i32, %arg1: i32) -> (i32, i32) {
    %c0_i32 = arith.constant 0 : i32
    %c0_i32_0 = arith.constant 0 : i32
    return %arg1, %c0_i32 : i32, i32
  }
  func.func @transform_2(%arg0: i32, %arg1: i32) -> (i32, i32) {
    %c0_i32 = arith.constant 0 : i32
    return %arg0, %arg1 : i32, i32
  }
}

</mosaic_0001>

<bundles_post_ra>
// kernel: _mha_fused_kv.4
= control target key start
LH: loop header
LB: loop body
LE: loop exit
PB: predicated region body
PF: predicated region fallthrough
CT: control target
= control target key end

     0   :  { %vm17_vm0 = vcmask 261120   ;;  %s199_s1 = inlined_call_operand.vmem [shape: f32[32,32], index: 1, kind: input, shape index: {}]   ;;  %s200_s0 = inlined_call_operand.vmem [shape: f32[16,32], index: 0, kind: input, shape index: {}]   ;;  %s201_s2 = inlined_call_operand.vmem [shape: f32[16,32], index: 2, kind: output, shape index: {}]  }
   0x1   :  { %v13_v0 = vld [vmem:[%s199_s1] sm:$0xff]  ;;  %v14_v1 = vld [vmem:[%s199_s1 + $0x8] sm:$0xff]  ;;  %vm143_vm1 = vmpackc.low %vm17_vm0, %vm17_vm0 }
   0x2   :  { %v142_v2 = vpack.c.bf16 %v14_v1, %v13_v0  ;;  %v15_v3 = vld [vmem:[%s199_s1 + $0x10] sm:$0xff]  ;;  %v16_v4 = vld [vmem:[%s199_s1 + $0x18] sm:$0xff]  ;;  %v11_v5 = vld [vmem:[%s200_s0] sm:$0xff] }
   0x3   :  { %v148_v6 = vpack.c.bf16 %v16_v4, %v15_v3  ;;  %139 = vmatprep.mubr.msk.f32.mxu0 %vm17_vm0, %v11_v5  ;;  %v12_v7 = vld [vmem:[%s200_s0 + $0x8] sm:$0xff] }
   0x4   :  { %144 = vmatprep.subr.msk.bf16.mxu0 %vm143_vm1, %v142_v2 }
   0x5   :  { %147 = vmatpush3.bf16.xpose.msk.msra.mxu0 %vm143_vm1, %v142_v2 }
   0x6   :  { %150 = vmatprep.subr.msk.bf16.mxu0 %vm143_vm1, %v148_v6 }
   0xd   :  { %153 = vmatpush3.bf16.xpose.msk.msra.mxu0 %vm143_vm1, %v148_v6 }
  0x14   :  { %140 = vmatmul.mubr.msk.f32.vlgmr.msra.gmra.mrb[0].mxu0 %vm17_vm0, %v12_v7 }
  0xe7   :  { %v141_v8 = vpop.f32.mrb[0].mxu0 }
  0xe8   :  { %v112_v9 = vmul.f32 0.35355338, %v141_v8  ;;  %v102_v10 = vpop.f32.mrb[1].mxu0 }
  0xe9   :  { %v111_v11 = vmul.f32 0.35355338, %v102_v10 }
  0xea   :  { %114 = vst.msk [vmem:[%s201_s2 + $0x8] sm:$0xff] %vm17_vm0, %v112_v9 }
  0xeb   :  { %113 = vst.msk [vmem:[%s201_s2] sm:$0xff] %vm17_vm0, %v111_v11 }

// kernel: _mha_fused_kv.5
= control target key start
LH: loop header
LB: loop body
LE: loop exit
PB: predicated region body
PF: predicated region fallthrough
CT: control target
= control target key end

     0   :  { %vm23_vm0 = vcmask 261120   ;;  %vm145_vm2 = vcmask 523264   ;;  %s337_s1 = inlined_call_operand.vmem [shape: f32[64,32], index: 1, kind: input, shape index: {}]   ;;  %s338_s0 = inlined_call_operand.vmem [shape: f32[32,32], index: 0, kind: input, shape index: {}]   ;;  %s339_s2 = inlined_call_operand.vmem [shape: f32[32,64], index: 2, kind: output, shape index: {}]  }
   0x1   :  { %v15_v0 = vld [vmem:[%s337_s1] sm:$0xff]  ;;  %v16_v1 = vld [vmem:[%s337_s1 + $0x8] sm:$0xff]  ;;  %vm255_vm1 = vmpackc.low %vm23_vm0, %vm23_vm0 }
   0x2   :  { %v200_v3 = vpack.c.bf16 %v16_v1, %v15_v0  ;;  %v17_v4 = vld [vmem:[%s337_s1 + $0x10] sm:$0xff]  ;;  %v18_v5 = vld [vmem:[%s337_s1 + $0x18] sm:$0xff]  ;;  %v11_v7 = vld [vmem:[%s338_s0] sm:$0xff] }
   0x3   :  { %v206_v6 = vpack.c.bf16 %v18_v5, %v17_v4  ;;  %v13_v8 = vld [vmem:[%s338_s0 + $0x10] sm:$0xff]  ;;  %v19_v9 = vld [vmem:[%s337_s1 + $0x20] sm:$0xff]  ;;  %v20_v10 = vld [vmem:[%s337_s1 + $0x28] sm:$0xff]  ;;  %194 = vmatprep.mubr.msk.f32.mxu0 %vm23_vm0, %v11_v7 }
   0x4   :  { %202 = vmatprep.subr.msk.bf16.mxu0 %vm255_vm1, %v200_v3  ;;  %224 = vmatprep.subr.msk.bf16.mxu1 %vm255_vm1, %v200_v3  ;;  %v212_v11 = vpack.c.bf16 %v20_v10, %v19_v9  ;;  %v21_v12 = vld [vmem:[%s337_s1 + $0x30] sm:$0xff]  ;;  %v22_v13 = vld [vmem:[%s337_s1 + $0x38] sm:$0xff]  ;;  %v12_v15 = vld [vmem:[%s338_s0 + $0x8] sm:$0xff] }
   0x5   :  { %205 = vmatpush3.bf16.xpose.msk.msra.mxu0 %vm255_vm1, %v200_v3  ;;  %228 = vmatpush3.bf16.xpose.msk.msra.mxu1 %vm255_vm1, %v200_v3  ;;  %v218_v14 = vpack.c.bf16 %v22_v13, %v21_v12  ;;  %v14_v16 = vld [vmem:[%s338_s0 + $0x18] sm:$0xff] }
   0x6   :  { %208 = vmatprep.subr.msk.bf16.mxu0 %vm255_vm1, %v206_v6  ;;  %225 = vmatprep.subr.msk.bf16.mxu1 %vm255_vm1, %v206_v6 }
   0x7   :  { %197 = vmatprep.mubr.msk.f32.mxu1 %vm23_vm0, %v13_v8 }
   0xd   :  { %211 = vmatpush3.bf16.xpose.msk.msra.mxu0 %vm255_vm1, %v206_v6  ;;  %229 = vmatpush3.bf16.xpose.msk.msra.mxu1 %vm255_vm1, %v206_v6 }
   0xe   :  { %214 = vmatprep.subr.msk.bf16.mxu0 %vm255_vm1, %v212_v11  ;;  %226 = vmatprep.subr.msk.bf16.mxu1 %vm255_vm1, %v212_v11 }
  0x15   :  { %217 = vmatpush3.bf16.xpose.msk.msra.mxu0 %vm255_vm1, %v212_v11  ;;  %230 = vmatpush3.bf16.xpose.msk.msra.mxu1 %vm255_vm1, %v212_v11 }
  0x16   :  { %220 = vmatprep.subr.msk.bf16.mxu0 %vm255_vm1, %v218_v14  ;;  %227 = vmatprep.subr.msk.bf16.mxu1 %vm255_vm1, %v218_v14 }
  0x1d   :  { %223 = vmatpush3.bf16.xpose.msk.msra.mxu0 %vm255_vm1, %v218_v14  ;;  %231 = vmatpush3.bf16.xpose.msk.msra.mxu1 %vm255_vm1, %v218_v14 }
  0x24   :  { %195 = vmatmul.mubr.msk.f32.vlgmr.msra.gmra.mrb[0].mxu0 %vm23_vm0, %v12_v15  ;;  %198 = vmatmul.mubr.msk.f32.vlgmr.msra.gmra.mrb[0].mxu1 %vm23_vm0, %v14_v16 }
  0xf7   :  { %v196_v17 = vpop.f32.mrb[0].mxu0  ;;  %v199_v18 = vpop.f32.mrb[0].mxu1 }
  0xf8   :  { %147 = vst.msk [vmem:[%s339_s2 + $0x8] sm:$0xff] %vm145_vm2, %v196_v17  ;;  %149 = vst.msk [vmem:[%s339_s2 + $0x18] sm:$0xff] %vm145_vm2, %v199_v18  ;;  %v126_v19 = vpop.f32.mrb[1].mxu0  ;;  %v136_v20 = vpop.f32.mrb[1].mxu1 }
  0xf9   :  { %146 = vst.msk [vmem:[%s339_s2] sm:$0xff] %vm145_vm2, %v126_v19  ;;  %148 = vst.msk [vmem:[%s339_s2 + $0x10] sm:$0xff] %vm145_vm2, %v136_v20 }

// kernel: _mha_fused_kv.7
= control target key start
LH: loop header
LB: loop body
LE: loop exit
PB: predicated region body
PF: predicated region fallthrough
CT: control target
= control target key end

     0   :  { %vm18_vm0 = vcmask 261120   ;;  %s246_s0 = inlined_call_operand.vmem [shape: f32[16,32], index: 0, kind: input, shape index: {}]   ;;  %s247_s1 = inlined_call_operand.vmem [shape: f32[32,32], index: 1, kind: input, shape index: {}]   ;;  %s248_s2 = inlined_call_operand.hbm [shape: f32[16,32], index: 2, kind: output, shape index: {}]  }
   0x1   :  { %v14_v0 = vld [vmem:[%s247_s1] sm:$0xff]  ;;  %v15_v1 = vld [vmem:[%s247_s1 + $0x8] sm:$0xff]  ;;  %v16_v2 = vld [vmem:[%s247_s1 + $0x10] sm:$0xff] }
   0x2   :  { %v153_v3 = vpack.c.bf16 %v15_v1, %v14_v0  ;;  %vm154_vm1 = vmpackc.low %vm18_vm0, %vm18_vm0  ;;  %v17_v4 = vld [vmem:[%s247_s1 + $0x18] sm:$0xff]  ;;  %v12_v5 = vld [vmem:[%s246_s0] sm:$0xff] }
   0x3   :  { %v159_v6 = vpack.c.bf16 %v17_v4, %v16_v2  ;;  %150 = vmatprep.mubr.msk.f32.mxu0 %vm18_vm0, %v12_v5 }
   0x4   :  { %7 = vsyncpa [#allocation3], 0  ;;  %155 = vmatprep.subr.msk.bf16.mxu0 %vm154_vm1, %v153_v3  ;;  %v13_v7 = vld [vmem:[%s246_s0 + $0x8] sm:$0xff]  ;;  %s192_s21 = smov [#allocation2]  }
   0x5   :  { %158 = vmatpush3.bf16.xpose.msk.msra.mxu0 %vm154_vm1, %v153_v3  ;;  %s119_s1 = sshll.u32 %s192_s21, 4  ;;  %s120_s1 = int_to_ptr.vmem [resolvable:$true] %s119_s1 }
   0x6   :  { %161 = vmatprep.subr.msk.bf16.mxu0 %vm154_vm1, %v159_v6  ;;  %s168_s22 = scalar_lea.vmem %s120_s1, 256  ;;  %p173_p1 = scmp.lt.s32.totalorder %s120_s1, %s120_s1 }
   0x7   :  { %p169_p0 = scmp.ne.s32.totalorder %s120_s1, %s168_s22  ;;  %p174_p2 = scmp.lt.s32.totalorder %s168_s22, %s168_s22 }
   0x9   :  { %p175_p3 = por %p174_p2, %p173_p1 }
   0xb   :  { %p176_p4 = pnand %p175_p3, %p169_p0 }
   0xd   :  { %164 = vmatpush3.bf16.xpose.msk.msra.mxu0 %vm154_vm1, %v159_v6 }
  0x14   :  { %151 = vmatmul.mubr.msk.f32.vlgmr.msra.gmra.mrb[0].mxu0 %vm18_vm0, %v13_v7 }
  0xe7   :  { %v152_v8 = vpop.f32.mrb[0].mxu0 }
  0xe8   :  { %113 = vst.msk [vmem:[#allocation2 + $0x8] sm:$0xff] %vm18_vm0, %v152_v8  ;;  %v103_v9 = vpop.f32.mrb[1].mxu0 }
  0xe9   :  { %112 = vst.msk [vmem:[#allocation2] sm:$0xff] %vm18_vm0, %v103_v9 }
  0xea   :  { %179 = shalt.err (!%p176_p4)
}
  0xeb   :  { %s180_s24 = scalar_lea.hbm %s248_s2, 256 }
  0xec   :  { %p181_p5 = scmp.ne.s32.totalorder %s248_s2, %s180_s24  ;;  %p184_p6 = scmp.lt.u32.totalorder %s180_s24, %s248_s2 }
  0xee   :  { %p186_p7 = pnand %p184_p6, %p181_p5 }
  0xf0   :  { %189 = shalt.err (!%p186_p7)
}
  0xf1   :  { %s193_s29 = smov 128   ;;  %s194_s30 = smov 8  }
  0xf2   :  { %125 = dma.vmem_to_hbm [thread:$0]  %s120_s1, 256, %s248_s2, [#allocation3], %s193_s29, %s193_s29, %s194_s30  }
  0xf3   :  { %190 = dma.done.wait [#allocation3], 256  }
  0xf4   :  { %191 = vsyncadd [#allocation3], 4294967040 }
  0xf5   :  { %129 = vsyncpa [#allocation3], 1 }

// kernel: _mha_fused_kv.6
= control target key start
LH: loop header
LB: loop body
LE: loop exit
PB: predicated region body
PF: predicated region fallthrough
CT: control target
= control target key end

     0   :  { %s1695_s0 = inlined_call_operand.vmem [shape: s32[2], index: 0, kind: input, shape index: {}]   ;;  %s1696_s1 = inlined_call_operand.vmem [shape: f32[2,8,32], index: 1, kind: input, shape index: {}]   ;;  %s1697_s2 = inlined_call_operand.vmem [shape: f32[2,16,64], index: 2, kind: input, shape index: {}]   ;;  %s1698_s3 = inlined_call_operand.vmem [shape: f32[2,8,32], index: 3, kind: output, shape index: {}]  }
   0x1   :  { %s8_s14 = sshll.u32 %s1695_s0, 4  ;;  %s9_s14 = int_to_ptr.vmem [resolvable:$true] %s8_s14 }
   0x2   :  { %s1422_s15 = scalar_lea.vmem %s9_s14, 16  ;;  %p1427_p1 = scmp.lt.s32.totalorder %s9_s14, %s9_s14 }
   0x3   :  { %p1423_p0 = scmp.ne.s32.totalorder %s9_s14, %s1422_s15  ;;  %p1428_p2 = scmp.lt.s32.totalorder %s1422_s15, %s1422_s15 }
   0x5   :  { %p1429_p3 = por %p1428_p2, %p1427_p1 }
   0x7   :  { %p1430_p4 = pnand %p1429_p3, %p1423_p0 }
   0x9   :  { %1433 = shalt.err (!%p1430_p4)  }
   0xa   :  { %s1460_s16 = smov [#allocation6]  }
   0xb   :  { %11 = dma.vmem_to_smem %s9_s14, 16, %s1460_s16, [#allocation5] }
   0xc   :  { %1446 = dma.done.wait [#allocation5], 16 }
   0xd   :  { %1447 = vsyncadd [#allocation5], 4294967280 }
   0xe   :  { %13 = sfence }
   0xf   :  { %s1499_s17 = smov 0   ;;  %s1501_s18 = smov 0  }
  0x10   :  { %s1503_s19 = smov 0  }
  0x11 LB: > { %s38_s0 = sadd.s32 1, %s1454_s18  ;;  %p1189_p5 = scmp.ge.s32.totalorder %s1458_s19, 1  ;;  %s1458_s19 = sphi %s1503_s19, %s19_s19   ;;  %s1454_s18 = sphi %s1501_s18, %s1704_s18   ;;  %s1450_s17 = sphi %s1499_s17, %s1703_s17  }
  0x12   : > { %p40_p6 = scmp.ge.s32.totalorder %s38_s0, 2  ;;  %p161_p7 = scmp.lt.s32.totalorder %s1458_s19, 3 }
  0x14   : > { %s1706_s0 = smov (%p40_p6, %s38_s0), 0  ;;  %p162_p8 = pnand %p1189_p5, %p161_p7 }
  0x15   : > { %p196_p9 = scmp.lt.s32.totalorder (!%p162_p8), %s1450_s17, 1  ;;  %v1461_v0 = vmov (!%p162_p8), 0.0|0.0   ;;  %vm1462_vm0 = vmmov (!%p162_p8), 0   ;;  %v1463_v1 = vmov (!%p162_p8), 0.0   ;;  %vm246_vm1 = vcmask (!%p162_p8), 64512   ;;  %s238_s29 = sld [smem:[#allocation6 + %s1450_s17]] (!%p162_p8) }
  0x16   : > { %165 = sbr.rel (%p162_p8) target bundleno = 2424 (0x978), region = 28  ;;  %1293 = vmatprep.subr.bf16.mxu0 (!%p162_p8), %v1461_v0  ;;  %1241 = vmatprep.mubr.msk.f32.mxu0 (!%p162_p8), %vm1462_vm0, %v1463_v1  ;;  %vm1535_vm2 = vmpackc.low (!%p162_p8), %vm246_vm1, %vm246_vm1  ;;  %vm226_vm3 = vcmask (!%p162_p8), 7168   ;;  %v1464_v7 = vmov (!%p162_p8), -inf   ;;  %v240_v8 = vlaneseq (!%p162_p8)  ;;  %vm328_vm5 = vcmask (!%p162_p8), 130048   ;;  %s1466_s30 = smov (!%p162_p8), 96  }
  0x17   : > { %1297 = vmatprep.subr.bf16.mxu1 (!%p162_p8), %v1461_v0  ;;  %1248 = vmatprep.mubr.msk.f32.mxu1 (!%p162_p8), %vm1462_vm0, %v1463_v1  ;;  %227 = vst.msk [vmem:[#allocation2] sm:$0xff] (!%p162_p8), %vm226_vm3, %v1464_v7  ;;  %228 = vst.msk [vmem:[#allocation2 + $0x8] sm:$0xff] (!%p162_p8), %vm226_vm3, %v1464_v7  ;;  %v1465_v16 = vmov (!%p162_p8), 0   ;;  %s1467_s4 = smov (!%p162_p8), 120   ;;  %s1468_s5 = smov (!%p162_p8), 88   ;;  %vm235_vm6 = vcmask (!%p162_p8), 261120  }
  0x18   : > { %229 = vst.msk [vmem:[#allocation2 + $0x10] sm:$0xff] (!%p162_p8), %vm226_vm3, %v1464_v7  ;;  %230 = vst.msk [vmem:[#allocation2 + $0x18] sm:$0xff] (!%p162_p8), %vm226_vm3, %v1464_v7  ;;  %v241_v9 = vand.u32 (!%p162_p8), 127, %v240_v8  ;;  %1361 = vset.pattern.permute.xlu0 (!%p162_p8), %v1465_v16  ;;  %1382 = vset.pattern.permute.xlu1 (!%p162_p8), %v1465_v16  ;;  %s1469_s6 = smov (!%p162_p8), 112   ;;  %s1470_s7 = smov (!%p162_p8), 80   ;;  %vm640_vm7 = vcmask (!%p162_p8), 130112  }
  0x19   : > { %231 = vst.msk [vmem:[#allocation3] sm:$0xff] (!%p162_p8), %vm226_vm3, %v1463_v1  ;;  %232 = vst.msk [vmem:[#allocation3 + $0x8] sm:$0xff] (!%p162_p8), %vm226_vm3, %v1463_v1  ;;  %s1471_s8 = smov (!%p162_p8), 104   ;;  %s1472_s9 = smov (!%p162_p8), 72   ;;  %vm842_vm8 = vcmask (!%p162_p8), 195712   ;;  %vm1044_vm9 = vcmask (!%p162_p8), 261312  }
  0x1a   : > { %233 = vst.msk [vmem:[#allocation3 + $0x10] sm:$0xff] (!%p162_p8), %vm226_vm3, %v1463_v1  ;;  %234 = vst.msk [vmem:[#allocation3 + $0x18] sm:$0xff] (!%p162_p8), %vm226_vm3, %v1463_v1  ;;  %s1473_s10 = smov (!%p162_p8), 8   ;;  %s1474_s11 = smov (!%p162_p8), 16  }
  0x1b   : > { %v244_v10 = vstv (!%p162_p8), %s238_s29  ;;  %236 = vst.msk [vmem:[#allocation4] sm:$0xff] (!%p162_p8), %vm235_vm6, %v1463_v1  ;;  %s1475_s12 = smov (!%p162_p8), 24  }
  0x1c   : > { %vm1567_vm4 = vcmp.ge.s32.totalorder (!%p162_p8), %v241_v9, %v244_v10 }
  0x1d   : > { %s1524_s20 = scalar_select %p196_p9, %s1450_s17, 1 }
  0x1e   : > { %v1579_v18 = vld [vmem:[#allocation2] sm:$0xff]  ;;  %v1608_v41 = vld [vmem:[#allocation2 + $0x8] sm:$0xff] }
  0x1f   : > { %s1212_s21 = sshll.u32 %s1524_s20, 4  ;;  %s1190_s25 = sshll.u32 %s1524_s20, 3 }
  0x20   : > { %s211_s24 = scalar_lea.vmem %s1697_s2, %s1212_s21  ;;  %s202_s28 = scalar_lea.vmem %s1696_s1, %s1190_s25 }
  0x21   : > { %v220_v2 = vld [vmem:[%s211_s24] sm:$0xff]  ;;  %v221_v3 = vld [vmem:[%s211_s24 + $0x8] sm:$0xff]  ;;  %s219_s15 = scalar_lea.vmem %s1698_s3, %s1190_s25 }
  0x22   : > { %v1294_v5 = vpack.c.bf16 %v221_v3, %v220_v2  ;;  %v1548_v6 = vld [vmem:[%s202_s28] sm:$0xff]  ;;  %v1574_v17 = vpack.i.bf16 %v221_v3, %v220_v2  ;;  %v727_v2 = vld [vmem:[#allocation2 + $0x10] sm:$0xff] }
  0x24   : > { %1296 = vmatpush3.bf16.xpose.msk.msra.mxu0 %vm1535_vm2, %v1294_v5  ;;  %1363 = vrot.lane.b32.xlu1 %v1574_v17, %s1466_s30 }
  0x25   : > { %1304 = vmatprep.subr.bf16.mxu0 %v1461_v0 }
  0x28   : > { %1368 = vrot.lane.b32.xlu1 %v1574_v17, %s1467_s4 }
  0x2b   : > { %1242 = vmatmul.mubr.msk.f32.vlgmr.msra.gmra.mrb[0].mxu0 %vm246_vm1, %v1548_v6 }
  0x2c   : > { %1262 = vmatprep.mubr.msk.f32.mxu0 %vm1462_vm0, %v1463_v1  ;;  %441 = vrot.lane.b32.xlu1 %v1548_v6, %s1467_s4 }
  0x96   : > { %v1364_v22 = vpop.permute.xlu1 %1363 }
  0x97   : > { %v1366_v23 = vunpack.i.h.bf16 %v1364_v22  ;;  %v1365_v24 = vunpack.i.l.bf16 %v1364_v22 }
  0x99   : > { %v1298_v25 = vpack.c.bf16 %v1366_v23, %v1365_v24 }
  0x9a   : > { %v1369_v29 = vpop.permute.xlu1 %1368 }
  0x9b   : > { %1299 = vmatpush3.bf16.msra.mxu1 %v1298_v25  ;;  %v1371_v30 = vunpack.i.h.bf16 %v1369_v29  ;;  %v1370_v31 = vunpack.i.l.bf16 %v1369_v29 }
  0x9c   : > { %1300 = vmatprep.subr.bf16.mxu1 %v1461_v0 }
  0x9d   : > { %v1301_v32 = vpack.c.bf16 %v1371_v30, %v1370_v31 }
  0x9e   : > { %v442_v34 = vpop.permute.xlu1 %441 }
  0xfe   : > { %v322_v12 = vpop.f32.mrb[0].mxu0 }
  0xff   : > { %v326_v13 = vsel %vm1567_vm4, -1000000.0, %v322_v12  ;;  %v1243_v14 = vpop.f32.mrb[1].mxu0 }
 0x100   : > { %v329_v15 = vsel %vm328_vm5, %v326_v13, -inf }
 0x101   : > { %330 = vmax.xlane.f32.xlu0 %v329_v15 }
 0x18e   : > { %v331_v19 = vpop.xlane.xlu0 %330 }
 0x18f   : > { %v1582_v20 = vmax.f32 %v1579_v18, %v331_v19 }
 0x191   : > { %v333_v21 = vsub.f32 %v1579_v18, %v1582_v20  ;;  %440 = vst.msk [vmem:[#allocation2] sm:$0xff] %vm226_vm3, %v1582_v20  ;;  %338 = vperm.xlu0 %1361, %v1582_v20   ;;  %v946_v18 = vld [vmem:[#allocation3 + $0x18] sm:$0xff] }
 0x210   : > { %v339_v26 = vpop.permute.xlu0 %338 }
 0x211   : > { %v341_v27 = vsub.f32 %v326_v13, %v339_v26 }
 0x213   : > { %v342_v28 = vmul.f32 1.442695, %v341_v27 }
 0x215   : > { %1398 = vpow2.f32 %v342_v28 }
 0x21f   : > { %v1590_v33 = vpop.eup %1398 }
 0x220   : > { %1249 = vmatmul.mubr.msk.f32.vlgmr.msra.gmra.mrb[0].mxu1 %vm328_vm5, %v1590_v33 }
 0x221   : > { %1303 = vmatpush3.bf16.xpose.msk.msra.mxu1 %vm1535_vm2, %v1301_v32  ;;  %1255 = vmatprep.mubr.msk.f32.mxu1 %vm1462_vm0, %v1463_v1 }
 0x222   : > { %1311 = vmatprep.subr.bf16.mxu1 %v1461_v0 }
 0x228   : > { %1256 = vmatmul.mubr.msk.f32.vlgmr.msra.gmra.mrb[2].mxu1 %vm246_vm1, %v442_v34  ;;  %v929_v34 = vld [vmem:[#allocation2 + $0x18] sm:$0xff] }
 0x229   : > { %1276 = vmatprep.mubr.msk.f32.mxu1 %vm1462_vm0, %v1463_v1 }
 0x2f3   : > { %v1602_v35 = vpop.f32.mrb[0].mxu1 }
 0x2f4   : > { %v1250_v36 = vpop.f32.mrb[1].mxu1 }
 0x2fb   : > { %v519_v37 = vpop.f32.mrb[2].mxu1 }
 0x2fc   : > { %v523_v38 = vsel %vm1567_vm4, -1000000.0, %v519_v37  ;;  %v1257_v39 = vpop.f32.mrb[3].mxu1  ;;  %v542_v37 = vld [vmem:[#allocation3 + $0x8] sm:$0xff] }
 0x2fd   : > { %v526_v40 = vsel %vm328_vm5, %v523_v38, -inf }
 0x2fe   : > { %527 = vmax.xlane.f32.xlu1 %v526_v40 }
 0x30f   : > { %1373 = vrot.lane.b32.xlu1 %v1574_v17, %s1468_s5 }
 0x38b   : > { %v528_v42 = vpop.xlane.xlu1 %527 }
 0x38c   : > { %v1611_v43 = vmax.f32 %v1608_v41, %v528_v42 }
 0x38e   : > { %v530_v44 = vsub.f32 %v1608_v41, %v1611_v43  ;;  %642 = vst.msk [vmem:[#allocation2 + $0x8] sm:$0xff] %vm226_vm3, %v1611_v43  ;;  %535 = vperm.xlu0 %1361, %v1611_v43  }
 0x38f   : > { %v1374_v45 = vpop.permute.xlu1 %1373 }
 0x390   : > { %v1376_v46 = vunpack.i.h.bf16 %v1374_v45  ;;  %v1375_v47 = vunpack.i.l.bf16 %v1374_v45  ;;  %v531_v31 = vmul.f32 1.442695, %v530_v44 }
 0x392   : > { %1378 = vrot.lane.b32.xlu0 %v1574_v17, %s1469_s6  ;;  %v1305_v48 = vpack.c.bf16 %v1376_v46, %v1375_v47  ;;  %v744_v46 = vld [vmem:[#allocation3 + $0x10] sm:$0xff] }
 0x394   : > { %1306 = vmatpush3.bf16.msra.mxu0 %v1305_v48  ;;  %v346_v48 = vsel %vm328_vm5, %v1590_v33, 0.0 }
 0x395   : > { %1307 = vmatprep.subr.bf16.mxu0 %v1461_v0 }
 0x396   : > { %643 = vrot.lane.b32.xlu0 %v1548_v6, %s1469_s6 }
 0x40d   : > { %v536_v49 = vpop.permute.xlu0 %535 }
 0x40e   : > { %v538_v50 = vsub.f32 %v523_v38, %v536_v49 }
 0x410   : > { %v539_v51 = vmul.f32 1.442695, %v538_v50 }
 0x411   : > { %v1379_v52 = vpop.permute.xlu0 %1378 }
 0x412   : > { %1400 = vpow2.f32 %v539_v51  ;;  %v1381_v53 = vunpack.i.h.bf16 %v1379_v52  ;;  %v1380_v54 = vunpack.i.l.bf16 %v1379_v52 }
 0x414   : > { %v1308_v55 = vpack.c.bf16 %v1381_v53, %v1380_v54 }
 0x415   : > { %v644_v57 = vpop.permute.xlu0 %643 }
 0x41c   : > { %v1401_v56 = vpop.eup %1400 }
 0x41d   : > { %1263 = vmatmul.mubr.msk.f32.vlgmr.msra.gmra.mrb[2].mxu0 %vm328_vm5, %v1401_v56  ;;  %v544_v30 = vsel %vm328_vm5, %v1401_v56, 0.0 }
 0x41e   : > { %1310 = vmatpush3.bf16.xpose.msk.msra.mxu0 %vm1535_vm2, %v1308_v55  ;;  %1269 = vmatprep.mubr.msk.f32.mxu0 %vm1462_vm0, %v1463_v1 }
 0x41f   : > { %1318 = vmatprep.subr.bf16.mxu0 %v1461_v0 }
 0x425   : > { %1270 = vmatmul.mubr.msk.f32.vlgmr.msra.gmra.mrb[4].mxu0 %vm246_vm1, %v644_v57 }
 0x426   : > { %1290 = vmatprep.mubr.msk.f32.mxu0 %vm1462_vm0, %v1463_v1 }
 0x4f0   : > { %v1630_v58 = vpop.f32.mrb[2].mxu0 }
 0x4f1   : > { %v1264_v59 = vpop.f32.mrb[3].mxu0 }
 0x4f8   : > { %v721_v60 = vpop.f32.mrb[4].mxu0 }
 0x4f9   : > { %v725_v61 = vsel %vm1567_vm4, -1000000.0, %v721_v60  ;;  %v1271_v62 = vpop.f32.mrb[5].mxu0 }
 0x4fa   : > { %v728_v63 = vsel %vm328_vm5, %v725_v61, -inf }
 0x4fb   : > { %729 = vmax.xlane.f32.xlu0 %v728_v63 }
 0x588   : > { %v730_v3 = vpop.xlane.xlu0 %729 }
 0x589   : > { %v731_v5 = vmax.f32 %v727_v2, %v730_v3 }
 0x58b   : > { %v732_v7 = vsub.f32 %v727_v2, %v731_v5  ;;  %844 = vst.msk [vmem:[#allocation2 + $0x10] sm:$0xff] %vm226_vm3, %v731_v5  ;;  %737 = vperm.xlu1 %1382, %v731_v5   ;;  %v352_v5 = vld [vmem:[#allocation4] sm:$0xff] }
 0x58d   : > { %v733_v32 = vmul.f32 1.442695, %v732_v7 }
 0x58f   : > { %1384 = vrot.lane.b32.xlu1 %v1574_v17, %s1470_s7 }
 0x593   : > { %1389 = vrot.lane.b32.xlu1 %v1574_v17, %s1471_s8 }
 0x597   : > { %845 = vrot.lane.b32.xlu1 %v1548_v6, %s1471_s8 }
 0x60a   : > { %v738_v8 = vpop.permute.xlu1 %737 }
 0x60b   : > { %v740_v9 = vsub.f32 %v725_v61, %v738_v8  ;;  %v344_v61 = vld [vmem:[#allocation3] sm:$0xff] }
 0x60d   : > { %v741_v10 = vmul.f32 1.442695, %v740_v9 }
 0x60e   : > { %v1385_v12 = vpop.permute.xlu1 %1384 }
 0x60f   : > { %1402 = vpow2.f32 %v741_v10  ;;  %v1387_v13 = vunpack.i.h.bf16 %v1385_v12  ;;  %v1386_v14 = vunpack.i.l.bf16 %v1385_v12 }
 0x610   : > { %1404 = vpow2.f32 %v531_v31 }
 0x611   : > { %v1312_v15 = vpack.c.bf16 %v1387_v13, %v1386_v14  ;;  %1406 = vpow2.f32 %v733_v32 }
 0x612   : > { %v1390_v16 = vpop.permute.xlu1 %1389 }
 0x613   : > { %1313 = vmatpush3.bf16.msra.mxu1 %v1312_v15  ;;  %v1392_v19 = vunpack.i.h.bf16 %v1390_v16  ;;  %v1391_v22 = vunpack.i.l.bf16 %v1390_v16 }
 0x614   : > { %1314 = vmatprep.subr.bf16.mxu1 %v1461_v0 }
 0x615   : > { %v1315_v23 = vpack.c.bf16 %v1392_v19, %v1391_v22 }
 0x616   : > { %v846_v6 = vpop.permute.xlu1 %845 }
 0x619   : > { %v1403_v24 = vpop.eup %1402 }
 0x61a   : > { %1277 = vmatmul.mubr.msk.f32.vlgmr.msra.gmra.mrb[4].mxu1 %vm328_vm5, %v1403_v24  ;;  %v746_v4 = vsel %vm328_vm5, %v1403_v24, 0.0  ;;  %v1405_v11 = vpop.eup %1404 }
 0x61b   : > { %1283 = vmatprep.mubr.msk.f32.mxu1 %vm1462_vm0, %v1463_v1  ;;  %v543_v40 = vmul.f32 %v1405_v11, %v542_v37  ;;  %v1407_v42 = vpop.eup %1406 }
 0x61c   : > { %1317 = vmatpush3.bf16.xpose.msk.msra.mxu1 %vm1535_vm2, %v1315_v23  ;;  %v745_v41 = vmul.f32 %v1407_v42, %v744_v46 }
 0x623   : > { %1284 = vmatmul.mubr.msk.f32.vlgmr.msra.gmra.mrb[6].mxu1 %vm246_vm1, %v846_v6 }
 0x6ed   : > { %v1646_v25 = vpop.f32.mrb[4].mxu1 }
 0x6ee   : > { %v1278_v26 = vpop.f32.mrb[5].mxu1 }
 0x6f6   : > { %v923_v27 = vpop.f32.mrb[6].mxu1 }
 0x6f7   : > { %v927_v0 = vsel %vm1567_vm4, -1000000.0, %v923_v27  ;;  %v1285_v28 = vpop.f32.mrb[7].mxu1 }
 0x6f8   : > { %v930_v29 = vsel %vm328_vm5, %v927_v0, -inf }
 0x6f9   : > { %931 = vmax.xlane.f32.xlu1 %v930_v29 }
 0x6fd   : > { %545 = vadd.xlane.f32.xlu1 %v544_v30 }
 0x701   : > { %747 = vadd.xlane.f32.xlu1 %v746_v4 }
 0x786   : > { %v932_v36 = vpop.xlane.xlu1 %931 }
 0x787   : > { %v933_v38 = vmax.f32 %v929_v34, %v932_v36 }
 0x789   : > { %v934_v39 = vsub.f32 %v929_v34, %v933_v38  ;;  %1046 = vst.msk [vmem:[#allocation2 + $0x18] sm:$0xff] %vm226_vm3, %v933_v38  ;;  %939 = vperm.xlu0 %1361, %v933_v38  }
 0x78a   : > { %v546_v45 = vpop.xlane.xlu1 %545 }
 0x78b   : > { %v547_v47 = vadd.f32 %v546_v45, %v543_v40  ;;  %v935_v60 = vmul.f32 1.442695, %v934_v39 }
 0x78d   : > { %548 = vst.msk [vmem:[#allocation3 + $0x8] sm:$0xff] %vm226_vm3, %v547_v47  ;;  %1394 = vrot.lane.b32.xlu0 %v1574_v17, %s1472_s9 }
 0x78e   : > { %v748_v43 = vpop.xlane.xlu1 %747 }
 0x78f   : > { %v749_v44 = vadd.f32 %v748_v43, %v745_v41 }
 0x791   : > { %750 = vst.msk [vmem:[#allocation3 + $0x10] sm:$0xff] %vm226_vm3, %v749_v44 }
 0x794   : > { %v1060_v49 = vld [vmem:[#allocation3 + $0x8] sm:$0xff] }
 0x795   : > { %1408 = vrcp.f32 %v1060_v49 }
 0x798   : > { %v1070_v26 = vld [vmem:[#allocation3 + $0x10] sm:$0xff] }
 0x79f   : > { %v1409_v50 = vpop.eup %1408 }
 0x7ac   : > { %347 = vadd.xlane.f32.xlu0 %v346_v48 }
 0x7c2   : > { %636 = vrot.lane.b32.xlu0 %v1630_v58, %s1473_s10  ;;  %v334_v58 = vmul.f32 1.442695, %v333_v21 }
 0x7c6   : > { %1065 = vperm.xlu0 %1361, %v1409_v50  }
 0x808   : > { %v940_v51 = vpop.permute.xlu0 %939 }
 0x809   : > { %v942_v52 = vsub.f32 %v927_v0, %v940_v51 }
 0x80b   : > { %v943_v53 = vmul.f32 1.442695, %v942_v52 }
 0x80c   : > { %v1395_v17 = vpop.permute.xlu0 %1394 }
 0x80d   : > { %1410 = vpow2.f32 %v943_v53  ;;  %v1397_v54 = vunpack.i.h.bf16 %v1395_v17  ;;  %v1396_v55 = vunpack.i.l.bf16 %v1395_v17 }
 0x80e   : > { %1412 = vpow2.f32 %v334_v58 }
 0x80f   : > { %v1319_v56 = vpack.c.bf16 %v1397_v54, %v1396_v55  ;;  %1414 = vpow2.f32 %v935_v60 }
 0x811   : > { %1320 = vmatpush3.bf16.msra.mxu0 %v1319_v56 }
 0x817   : > { %v1411_v57 = vpop.eup %1410 }
 0x818   : > { %1291 = vmatmul.mubr.msk.f32.vlgmr.msra.gmra.mrb[6].mxu0 %vm328_vm5, %v1411_v57  ;;  %v948_v33 = vsel %vm328_vm5, %v1411_v57, 0.0  ;;  %v1413_v59 = vpop.eup %1412 }
 0x819   : > { %949 = vadd.xlane.f32.xlu1 %v948_v33  ;;  %v345_v62 = vmul.f32 %v1413_v59, %v344_v61  ;;  %v1415_v63 = vpop.eup %1414 }
 0x81a   : > { %v947_v20 = vmul.f32 %v1415_v63, %v946_v18 }
 0x82a   : > { %355 = vperm.xlu1 %1382, %v1413_v59  }
 0x82e   : > { %552 = vperm.xlu1 %1382, %v1405_v11  }
 0x832   : > { %754 = vperm.xlu1 %1382, %v1407_v42  }
 0x836   : > { %838 = vrot.lane.b32.xlu1 %v1646_v25, %s1474_s11 }
 0x839   : > { %v348_v2 = vpop.xlane.xlu0 %347 }
 0x83a   : > { %v349_v3 = vadd.f32 %v348_v2, %v345_v62  ;;  %956 = vperm.xlu1 %1382, %v1415_v63  }
 0x83c   : > { %351 = vst.msk [vmem:[#allocation3] sm:$0xff] %vm226_vm3, %v349_v3 }
 0x83d   : > { %v637_v15 = vpop.permute.xlu0 %636 }
 0x843   : > { %v1050_v25 = vld [vmem:[#allocation3] sm:$0xff] }
 0x845   : > { %v1066_v37 = vpop.permute.xlu0 %1065 }
 0x8a6   : > { %v950_v1 = vpop.xlane.xlu1 %949 }
 0x8a7   : > { %v951_v21 = vadd.f32 %v950_v1, %v947_v20 }
 0x8a9   : > { %952 = vst.msk [vmem:[#allocation3 + $0x18] sm:$0xff] %vm226_vm3, %v951_v21 }
 0x8aa   : > { %v356_v7 = vpop.permute.xlu1 %355 }
 0x8ab   : > { %v358_v8 = vmul.f32 %v356_v7, %v352_v5 }
 0x8ad   : > { %v438_v9 = vadd.f32 %v1602_v35, %v358_v8 }
 0x8ae   : > { %v553_v13 = vpop.permute.xlu1 %552 }
 0x8af   : > { %439 = vst.msk [vmem:[#allocation4] sm:$0xff] %vm246_vm1, %v438_v9 }
 0x8b0   : > { %v1080_v10 = vld [vmem:[#allocation3 + $0x18] sm:$0xff] }
 0x8b1   : > { %1416 = vrcp.f32 %v1080_v10 }
 0x8b2   : > { %v755_v22 = vpop.permute.xlu1 %754  ;;  %1418 = vrcp.f32 %v1050_v25 }
 0x8b3   : > { %1420 = vrcp.f32 %v1070_v26 }
 0x8b6   : > { %v549_v12 = vld [vmem:[#allocation4] sm:$0xff]  ;;  %v839_v6 = vpop.permute.xlu1 %838 }
 0x8b7   : > { %v555_v14 = vmul.f32 %v553_v13, %v549_v12 }
 0x8b9   : > { %v639_v16 = vadd.f32 %v637_v15, %v555_v14 }
 0x8ba   : > { %v957_v4 = vpop.permute.xlu1 %956 }
 0x8bb   : > { %v1417_v19 = vpop.eup %1416  ;;  %641 = vst.msk [vmem:[#allocation4] sm:$0xff] %vm640_vm7, %v639_v16 }
 0x8bc   : > { %1085 = vperm.xlu0 %1361, %v1417_v19   ;;  %v1419_v28 = vpop.eup %1418 }
 0x8bd   : > { %v1421_v29 = vpop.eup %1420 }
 0x8c2   : > { %v751_v23 = vld [vmem:[#allocation4] sm:$0xff] }
 0x8c3   : > { %v757_v24 = vmul.f32 %v755_v22, %v751_v23 }
 0x8c5   : > { %v841_v35 = vadd.f32 %v839_v6, %v757_v24 }
 0x8c7   : > { %843 = vst.msk [vmem:[#allocation4] sm:$0xff] %vm842_vm8, %v841_v35 }
 0x8ce   : > { %v953_v30 = vld [vmem:[#allocation4] sm:$0xff] }
 0x8cf   : > { %v959_v31 = vmul.f32 %v957_v4, %v953_v30 }
 0x8eb   : > { %v1035_v27 = vpop.f32.mrb[6].mxu0 }
 0x8ec   : > { %1040 = vrot.lane.b32.xlu1 %v1035_v27, %s1475_s12  ;;  %v1292_v0 = vpop.f32.mrb[7].mxu0 }
 0x8f0   : > { %1055 = vperm.xlu1 %1382, %v1419_v28  }
 0x8f4   : > { %1075 = vperm.xlu1 %1382, %v1421_v29  }
 0x93b   : > { %v1086_v42 = vpop.permute.xlu0 %1085 }
 0x95e   : > { %v1041_v32 = vpop.permute.xlu1 %1040 }
 0x95f   : > { %v1043_v34 = vadd.f32 %v1041_v32, %v959_v31 }
 0x961   : > { %1045 = vst.msk [vmem:[#allocation4] sm:$0xff] %vm1044_vm9, %v1043_v34 }
 0x968   : > { %v1052_v11 = vld [vmem:[#allocation4] sm:$0xff] }
 0x969   : > { %v1068_v39 = vmul.f32 %v1066_v37, %v1052_v11  ;;  %v1088_v46 = vmul.f32 %v1086_v42, %v1052_v11 }
 0x96f   : > { %v1056_v36 = vpop.permute.xlu1 %1055 }
 0x970   : > { %v1058_v38 = vmul.f32 %v1056_v36, %v1052_v11 }
 0x972   : > { %1059 = vst.msk [vmem:[%s219_s15] sm:$0xff] %vm246_vm1, %v1058_v38 }
 0x973   : > { %1069 = vst.msk [vmem:[%s219_s15] sm:$0xff] %vm640_vm7, %v1068_v39  ;;  %v1076_v40 = vpop.permute.xlu1 %1075 }
 0x974   : > { %v1078_v45 = vmul.f32 %v1076_v40, %v1052_v11 }
 0x976   : > { %1079 = vst.msk [vmem:[%s219_s15] sm:$0xff] %vm842_vm8, %v1078_v45 }
 0x977   : > { %1089 = vst.msk [vmem:[%s219_s15] sm:$0xff] %vm1044_vm9, %v1088_v46 }
 0x978 PF: > { %s19_s19 = sadd.s32 1, %s1458_s19   ;;  %s1703_s17 = smov %s1454_s18 }
 0x979   : > { %p16_p10 = scmp.ge.s32.totalorder %s19_s19, 4   ;;  %s1704_s18 = smov %s1706_s0 }
 0x97b   :  { %18 = sbr.rel (!%p16_p10) target bundleno = 17 (0x11), region = 75 }

</bundles_post_ra>
